<compile_context>
chip_gen: v7x
topology: tpu7x:2x2x1
jax: 0.10.0
libtpu: 0.0.40
codegen_flags: <defaults>
</compile_context>

<pallas_src>
import functools

import jax
import jax.numpy as jnp
import numpy as np
from jax import lax
from jax.experimental import pallas as pl
from jax.experimental.pallas import tpu as pltpu


def _decoder_fusion_kernel(x_ref, mask_ref, dw_ref, pw_ref, bias_ref, o_ref,
                           acc_ref, *, K, H, W, p, Nt):
    """Grid = (B, N//Nt); one step streams Nt feature maps of one batch.

    x_ref    : (Nt, C, H*W)   un-padded feature maps (original dtype)
    mask_ref : (K*K, H*W)     0/1 halo masks, one row per (dy, dx) tap
    dw_ref   : (C, K*K)       depthwise taps, already scaled by 1/N
    pw_ref   : (C, C)         pointwise weight (C_out, C_in), BN scale folded in
    bias_ref : (C, 1)         folded BN bias
    o_ref    : (C, H*W)       output block (resident across the N axis)
    acc_ref  : (C, H*W) f32   running sum over N               (VMEM scratch)
    """
    HW = H * W
    nb = pl.program_id(1)

    # --- init the running sum at the first N-block of this batch ---
    @pl.when(nb == 0)
    def _init():
        acc_ref[...] = jnp.zeros_like(acc_ref)

    # --- sum the Nt maps of this block in registers, one VMEM accumulate ---
    def _body(i, s):
        return s + x_ref[i].astype(jnp.float32)

    acc_ref[...] += lax.fori_loop(0, Nt, _body,
                                  jnp.zeros(acc_ref.shape, jnp.float32),
                                  unroll=True)

    # --- on the last N-block: depthwise conv + 1x1 conv + BN + SiLU ---
    @pl.when(nb == pl.num_programs(1) - 1)
    def _finalize():
        C = acc_ref.shape[0]
        acc = acc_ref[...]            # (C, HW) f32; 1/N already folded into dw
        dw = dw_ref[...]              # (C, K*K) f32
        masks = mask_ref[...]         # (K*K, HW) f32 in {0, 1}

        # Depthwise KxK "same" conv in the flat (C, H*W) layout:
        #   out[c, h*W+w] = sum_{dy,dx} dw[c,dy,dx] * acc[c, (h+dy-p)*W+(w+dx-p)]
        # Slicing the doubled buffer at offset `off` is a cyclic lane rotation
        # of acc by `off` (== pltpu.roll); out-of-image sources (including the
        # row wrap-around of the flat shift) are zeroed by the tap's halo mask.
        doubled = jnp.concatenate([acc, acc], axis=1)   # (C, 2*HW)
        conv = jnp.zeros((C, HW), jnp.float32)
        for dy in range(K):
            for dx in range(K):
                t = dy * K + dx
                off = ((dy - p) * W + (dx - p)) % HW
                src = acc if off == 0 else doubled[:, off:off + HW]
                conv = conv + (src * masks[t:t + 1, :]) * dw[:, t:t + 1]

        # Pointwise 1x1 conv as one lane-dense MXU matmul over channels
        # (BN scale already folded into the rows of pw).  Kept in f32 so the
        # folded BN scale is not quantized; the matmul is once per batch.
        y = jnp.dot(pw_ref[...], conv, preferred_element_type=jnp.float32)

        # Folded BN bias + SiLU.
        y = y + bias_ref[...]
        y = y * jax.nn.sigmoid(y)

        o_ref[...] = y.astype(o_ref.dtype)


def _largest_divisor_not_above(n, cap):
    cap = max(1, min(n, cap))
    for d in range(cap, 0, -1):
        if n % d == 0:
            return d
    return 1


def decoder_fusion_pallas(features_nchw, dw_weight, pw_weight,
                          gamma, beta, running_mean, running_var, eps=1e-5):
    """features_nchw: (B, N, C, H, W)  stacked feature maps to be fused (NCHW).
       dw_weight    : (C, K, K)        PyTorch depthwise conv weight, squeezed.
       pw_weight    : (C_out, C_in)    PyTorch 1x1 conv weight, squeezed.
    """
    B, N, C, H, W = features_nchw.shape
    K = dw_weight.shape[-1]
    # SMSU.get_same_padding(224, K, 1, 1) == (K-1)//2 for odd K only.
    if K % 2 != 1:
        raise ValueError("even kernel sizes need asymmetric 'same' padding")
    p = (K - 1) // 2
    HW = H * W
    out_dtype = features_nchw.dtype

    # --- layout: NCHW kept end-to-end; only trailing dims merged (free) ---
    x = features_nchw.reshape(B, N, C, HW)

    # --- parameter folding (plain JAX glue on tiny arrays) ---
    scale = (gamma / jnp.sqrt(running_var + eps)).astype(jnp.float32)      # (C,)
    dw = (dw_weight.reshape(C, K * K).astype(jnp.float32)
          / np.float32(N))                                                 # (C,K*K)
    pw = pw_weight.astype(jnp.float32) * scale[:, None]                    # (Co,Ci)
    bias = (beta - running_mean * scale).reshape(C, 1).astype(jnp.float32)

    # --- 0/1 halo masks for the "same" padding, one row per (dy, dx) tap ---
    hh, ww = np.meshgrid(np.arange(H), np.arange(W), indexing="ij")
    masks_np = np.empty((K * K, HW), np.float32)
    for dy in range(K):
        for dx in range(K):
            valid = ((hh + dy - p >= 0) & (hh + dy - p < H)
                     & (ww + dx - p >= 0) & (ww + dx - p < W))
            masks_np[dy * K + dx] = valid.reshape(HW).astype(np.float32)
    masks = jnp.asarray(masks_np)

    # --- block the N axis so each streamed input block is a few MB ---
    per_map_bytes = C * HW * np.dtype(features_nchw.dtype).itemsize
    target_block_bytes = 4 * 1024 * 1024
    vmem_input_budget = 12 * 1024 * 1024        # 2x double-buffered -> <=24 MiB
    cap = min(max(1, target_block_bytes // max(per_map_bytes, 1)),
              max(1, vmem_input_budget // max(2 * per_map_bytes, 1)))
    Nt = _largest_divisor_not_above(N, cap)
    n_blocks = N // Nt

    # --- derive the VMEM limit from the actual buffer sizes ---
    bytes_in = 2 * Nt * per_map_bytes                          # dbl-buffered in
    bytes_out = 2 * C * HW * np.dtype(out_dtype).itemsize      # dbl-buffered out
    bytes_const = 2 * 4 * (K * K * HW + C * K * K + C * C + C)
    bytes_acc = 4 * C * HW
    bytes_tmp = 8 * 4 * C * HW                                 # finalize temps
    est = bytes_in + bytes_out + bytes_const + bytes_acc + bytes_tmp
    vmem_limit = int(min(64 * 1024 * 1024, max(32 * 1024 * 1024, 2 * est)))

    kernel = functools.partial(_decoder_fusion_kernel,
                               K=K, H=H, W=W, p=p, Nt=Nt)

    # Deeper input pipelining only pays off when the N axis has several blocks
    # (the finalize at the last block is long; keep streaming behind it).
    feat_pipeline = pl.Buffered(3) if n_blocks >= 3 else None

    out_flat = pl.pallas_call(
        kernel,
        out_shape=jax.ShapeDtypeStruct((B, C, HW), out_dtype),
        grid_spec=pltpu.PrefetchScalarGridSpec(
            num_scalar_prefetch=0,
            grid=(B, n_blocks),                      # N last = reduction axis
            in_specs=[
                pl.BlockSpec((None, Nt, C, HW), lambda b, n: (b, n, 0, 0),
                             pipeline_mode=feat_pipeline),
                pl.BlockSpec((K * K, HW), lambda b, n: (0, 0)),
                pl.BlockSpec((C, K * K), lambda b, n: (0, 0)),
                pl.BlockSpec((C, C), lambda b, n: (0, 0)),
                pl.BlockSpec((C, 1), lambda b, n: (0, 0)),
            ],
            out_specs=pl.BlockSpec((None, C, HW), lambda b, n: (b, 0, 0)),
            scratch_shapes=[
                pltpu.VMEM((C, HW), jnp.float32),    # running sum over N
            ],
        ),
        compiler_params=pltpu.CompilerParams(
            dimension_semantics=("parallel", "arbitrary"),
            vmem_limit_bytes=vmem_limit,
        ),
    )(x, masks, dw, pw, bias)

    return out_flat.reshape(B, C, H, W)              # free: splits trailing dim


def decoder_fusion_reference(features_nchw, dw_weight, pw_weight,
                             gamma, beta, running_mean, running_var, eps=1e-5):
    """Pure-JAX reference mirroring the PyTorch forward (eval mode)."""
    B, N, C, H, W = features_nchw.shape
    K = dw_weight.shape[-1]
    p = (K - 1) // 2
    x = jnp.mean(features_nchw.astype(jnp.float32), axis=1)          # (B, C, H, W)
    y = jax.lax.conv_general_dilated(
        x, dw_weight[:, None, :, :].astype(jnp.float32),
        window_strides=(1, 1), padding=[(p, p), (p, p)],
        dimension_numbers=('NCHW', 'OIHW', 'NCHW'),
        feature_group_count=C)
    y = jnp.einsum('bchw,oc->bohw', y, pw_weight.astype(jnp.float32))
    scale = gamma / jnp.sqrt(running_var + eps)
    shift = beta - running_mean * scale
    y = y * scale[None, :, None, None] + shift[None, :, None, None]
    return y * jax.nn.sigmoid(y)


if __name__ == "__main__":
    # Small deterministic setup consistent with the module.
    B, N, C, H, W = 2, 3, 8, 16, 16
    kernel_size_array = [3, 5]
    K = max(kernel_size_array)

    key = jax.random.PRNGKey(0)
    k_feat, k_dw, k_pw, k_g, k_b, k_m, k_v = jax.random.split(key, 7)

    features = jax.random.normal(k_feat, (B, N, C, H, W), dtype=jnp.float32)
    dw_weight = jax.random.normal(k_dw, (C, K, K), dtype=jnp.float32) * 0.1
    pw_weight = jax.random.normal(k_pw, (C, C), dtype=jnp.float32) * 0.2
    gamma = jax.random.uniform(k_g, (C,), minval=0.5, maxval=1.5)
    beta = jax.random.normal(k_b, (C,)) * 0.1
    running_mean = jax.random.normal(k_m, (C,)) * 0.1
    running_var = jax.random.uniform(k_v, (C,), minval=0.5, maxval=1.5)

    out = decoder_fusion_pallas(features, dw_weight, pw_weight,
                                gamma, beta, running_mean, running_var)
    out = jax.block_until_ready(out)

    ref = decoder_fusion_reference(features, dw_weight, pw_weight,
                                   gamma, beta, running_mean, running_var)
    np.testing.assert_allclose(np.asarray(out), np.asarray(ref),
                               rtol=1e-3, atol=1e-3)
    print("KERNEL_OK")
</pallas_src>

<mosaic_0001>
module attributes {stable_mosaic.version = 11 : i64} {
  func.func @_decoder_fusion_kernel(%arg0: i32, %arg1: i32, %arg2: memref<1x3x8x256xf32, #tpu.memory_space<vmem>>, %arg3: memref<25x256xf32, #tpu.memory_space<vmem>>, %arg4: memref<8x25xf32, #tpu.memory_space<vmem>>, %arg5: memref<8x8xf32, #tpu.memory_space<vmem>>, %arg6: memref<8x1xf32, #tpu.memory_space<vmem>>, %arg7: memref<1x8x256xf32, #tpu.memory_space<vmem>>, %arg8: memref<8x256xf32, #tpu.memory_space<vmem>>) attributes {dimension_semantics = [#tpu.dimension_semantics<parallel>, #tpu.dimension_semantics<arbitrary>], iteration_bounds = array<i64: 2, 1>, scalar_prefetch = 0 : i64, scratch_operands = 1 : i64, tpu.core_type = #tpu.core_type<tc>, window_params = [{transform_indices = @transform_0, window_bounds = array<i64: 1, 3, 8, 256>}, {pipeline_mode = #tpu.pipeline_mode<synchronous>, transform_indices = @transform_1, window_bounds = array<i64: 25, 256>}, {pipeline_mode = #tpu.pipeline_mode<synchronous>, transform_indices = @transform_2, window_bounds = array<i64: 8, 25>}, {pipeline_mode = #tpu.pipeline_mode<synchronous>, transform_indices = @transform_3, window_bounds = array<i64: 8, 8>}, {pipeline_mode = #tpu.pipeline_mode<synchronous>, transform_indices = @transform_4, window_bounds = array<i64: 8, 1>}, {transform_indices = @transform_5, window_bounds = array<i64: 1, 8, 256>}]} {
    %c0_i32 = arith.constant 0 : i32
    %0 = arith.cmpi eq, %arg1, %c0_i32 : i32
    %1 = arith.extui %0 : i1 to i32
    %c0_i32_0 = arith.constant 0 : i32
    %2 = arith.cmpi ne, %1, %c0_i32_0 : i32
    scf.if %2 {
      %cst_16 = arith.constant 0.000000e+00 : f32
      %22 = vector.broadcast %cst_16 : f32 to vector<8x256xf32>
      %c0_17 = arith.constant 0 : index
      %c0_18 = arith.constant 0 : index
      %23 = vector.load %arg8[%c0_17, %c0_18] : memref<8x256xf32, #tpu.memory_space<vmem>>, vector<8x256xf32>
      tpu.vector_store %arg8[%c0_17, %c0_18], %22 {strides = array<i32>} : memref<8x256xf32, #tpu.memory_space<vmem>>, vector<8x256xf32>,
    } else {
    }
    %c0 = arith.constant 0 : index
    %c0_1 = arith.constant 0 : index
    %3 = vector.load %arg8[%c0, %c0_1] : memref<8x256xf32, #tpu.memory_space<vmem>>, vector<8x256xf32>
    %cst = arith.constant 0.000000e+00 : f32
    %4 = vector.broadcast %cst : f32 to vector<8x256xf32>
    %c0_i32_2 = arith.constant 0 : i32
    %c0_3 = arith.constant 0 : index
    %5 = arith.index_cast %c0_i32_2 : i32 to index
    %c0_4 = arith.constant 0 : index
    %c0_5 = arith.constant 0 : index
    %6 = vector.load %arg2[%c0_3, %5, %c0_4, %c0_5] : memref<1x3x8x256xf32, #tpu.memory_space<vmem>>, vector<1x1x8x256xf32>
    %7 = vector.shape_cast %6 : vector<1x1x8x256xf32> to vector<8x256xf32>
    %8 = arith.addf %4, %7 : vector<8x256xf32>
    %c1_i32 = arith.constant 1 : i32
    %c0_6 = arith.constant 0 : index
    %9 = arith.index_cast %c1_i32 : i32 to index
    %c0_7 = arith.constant 0 : index
    %c0_8 = arith.constant 0 : index
    %10 = vector.load %arg2[%c0_6, %9, %c0_7, %c0_8] : memref<1x3x8x256xf32, #tpu.memory_space<vmem>>, vector<1x1x8x256xf32>
    %11 = vector.shape_cast %10 : vector<1x1x8x256xf32> to vector<8x256xf32>
    %12 = arith.addf %8, %11 : vector<8x256xf32>
    %c2_i32 = arith.constant 2 : i32
    %c0_9 = arith.constant 0 : index
    %13 = arith.index_cast %c2_i32 : i32 to index
    %c0_10 = arith.constant 0 : index
    %c0_11 = arith.constant 0 : index
    %14 = vector.load %arg2[%c0_9, %13, %c0_10, %c0_11] : memref<1x3x8x256xf32, #tpu.memory_space<vmem>>, vector<1x1x8x256xf32>
    %15 = vector.shape_cast %14 : vector<1x1x8x256xf32> to vector<8x256xf32>
    %16 = arith.addf %12, %15 : vector<8x256xf32>
    %c3_i32 = arith.constant 3 : i32
    %17 = arith.addf %3, %16 : vector<8x256xf32>
    %c0_12 = arith.constant 0 : index
    %c0_13 = arith.constant 0 : index
    %18 = vector.load %arg8[%c0_12, %c0_13] : memref<8x256xf32, #tpu.memory_space<vmem>>, vector<8x256xf32>
    tpu.vector_store %arg8[%c0_12, %c0_13], %17 {strides = array<i32>} : memref<8x256xf32, #tpu.memory_space<vmem>>, vector<8x256xf32>,
    %c0_i32_14 = arith.constant 0 : i32
    %19 = arith.cmpi eq, %arg1, %c0_i32_14 : i32
    %20 = arith.extui %19 : i1 to i32
    %c0_i32_15 = arith.constant 0 : i32
    %21 = arith.cmpi ne, %20, %c0_i32_15 : i32
    scf.if %21 {
      %c0_16 = arith.constant 0 : index
      %c0_17 = arith.constant 0 : index
      %22 = vector.load %arg8[%c0_16, %c0_17] : memref<8x256xf32, #tpu.memory_space<vmem>>, vector<8x256xf32>
      %c0_18 = arith.constant 0 : index
      %c0_19 = arith.constant 0 : index
      %23 = vector.load %arg4[%c0_18, %c0_19] : memref<8x25xf32, #tpu.memory_space<vmem>>, vector<8x25xf32>
      %c0_20 = arith.constant 0 : index
      %c0_21 = arith.constant 0 : index
      %24 = vector.load %arg3[%c0_20, %c0_21] : memref<25x256xf32, #tpu.memory_space<vmem>>, vector<25x256xf32>
      %25 = tpu.concatenate %22, %22 in 1 : vector<8x256xf32>, vector<8x256xf32> -> vector<8x512xf32>
      %cst_22 = arith.constant 0.000000e+00 : f32
      %26 = vector.broadcast %cst_22 : f32 to vector<8x256xf32>
      %27 = vector.extract_strided_slice %25 {offsets = [0, 222], sizes = [8, 256], strides = [1, 1]} : vector<8x512xf32> to vector<8x256xf32>
      %28 = vector.extract_strided_slice %24 {offsets = [0, 0], sizes = [1, 256], strides = [1, 1]} : vector<25x256xf32> to vector<1x256xf32>
      %29 = vector.broadcast %28 : vector<1x256xf32> to vector<8x256xf32>
      %30 = arith.mulf %27, %29 : vector<8x256xf32>
      %31 = vector.extract_strided_slice %23 {offsets = [0, 0], sizes = [8, 1], strides = [1, 1]} : vector<8x25xf32> to vector<8x1xf32>
      %32 = vector.broadcast %31 : vector<8x1xf32> to vector<8x256xf32>
      %33 = arith.mulf %30, %32 : vector<8x256xf32>
      %34 = arith.addf %26, %33 : vector<8x256xf32>
      %35 = vector.extract_strided_slice %25 {offsets = [0, 223], sizes = [8, 256], strides = [1, 1]} : vector<8x512xf32> to vector<8x256xf32>
      %36 = vector.extract_strided_slice %24 {offsets = [1, 0], sizes = [1, 256], strides = [1, 1]} : vector<25x256xf32> to vector<1x256xf32>
      %37 = vector.broadcast %36 : vector<1x256xf32> to vector<8x256xf32>
      %38 = arith.mulf %35, %37 : vector<8x256xf32>
      %39 = vector.extract_strided_slice %23 {offsets = [0, 1], sizes = [8, 1], strides = [1, 1]} : vector<8x25xf32> to vector<8x1xf32>
      %40 = vector.broadcast %39 : vector<8x1xf32> to vector<8x256xf32>
      %41 = arith.mulf %38, %40 : vector<8x256xf32>
      %42 = arith.addf %34, %41 : vector<8x256xf32>
      %43 = vector.extract_strided_slice %25 {offsets = [0, 224], sizes = [8, 256], strides = [1, 1]} : vector<8x512xf32> to vector<8x256xf32>
      %44 = vector.extract_strided_slice %24 {offsets = [2, 0], sizes = [1, 256], strides = [1, 1]} : vector<25x256xf32> to vector<1x256xf32>
      %45 = vector.broadcast %44 : vector<1x256xf32> to vector<8x256xf32>
      %46 = arith.mulf %43, %45 : vector<8x256xf32>
      %47 = vector.extract_strided_slice %23 {offsets = [0, 2], sizes = [8, 1], strides = [1, 1]} : vector<8x25xf32> to vector<8x1xf32>
      %48 = vector.broadcast %47 : vector<8x1xf32> to vector<8x256xf32>
      %49 = arith.mulf %46, %48 : vector<8x256xf32>
      %50 = arith.addf %42, %49 : vector<8x256xf32>
      %51 = vector.extract_strided_slice %25 {offsets = [0, 225], sizes = [8, 256], strides = [1, 1]} : vector<8x512xf32> to vector<8x256xf32>
      %52 = vector.extract_strided_slice %24 {offsets = [3, 0], sizes = [1, 256], strides = [1, 1]} : vector<25x256xf32> to vector<1x256xf32>
      %53 = vector.broadcast %52 : vector<1x256xf32> to vector<8x256xf32>
      %54 = arith.mulf %51, %53 : vector<8x256xf32>
      %55 = vector.extract_strided_slice %23 {offsets = [0, 3], sizes = [8, 1], strides = [1, 1]} : vector<8x25xf32> to vector<8x1xf32>
      %56 = vector.broadcast %55 : vector<8x1xf32> to vector<8x256xf32>
      %57 = arith.mulf %54, %56 : vector<8x256xf32>
      %58 = arith.addf %50, %57 : vector<8x256xf32>
      %59 = vector.extract_strided_slice %25 {offsets = [0, 226], sizes = [8, 256], strides = [1, 1]} : vector<8x512xf32> to vector<8x256xf32>
      %60 = vector.extract_strided_slice %24 {offsets = [4, 0], sizes = [1, 256], strides = [1, 1]} : vector<25x256xf32> to vector<1x256xf32>
      %61 = vector.broadcast %60 : vector<1x256xf32> to vector<8x256xf32>
      %62 = arith.mulf %59, %61 : vector<8x256xf32>
      %63 = vector.extract_strided_slice %23 {offsets = [0, 4], sizes = [8, 1], strides = [1, 1]} : vector<8x25xf32> to vector<8x1xf32>
      %64 = vector.broadcast %63 : vector<8x1xf32> to vector<8x256xf32>
      %65 = arith.mulf %62, %64 : vector<8x256xf32>
      %66 = arith.addf %58, %65 : vector<8x256xf32>
      %67 = vector.extract_strided_slice %25 {offsets = [0, 238], sizes = [8, 256], strides = [1, 1]} : vector<8x512xf32> to vector<8x256xf32>
      %68 = vector.extract_strided_slice %24 {offsets = [5, 0], sizes = [1, 256], strides = [1, 1]} : vector<25x256xf32> to vector<1x256xf32>
      %69 = vector.broadcast %68 : vector<1x256xf32> to vector<8x256xf32>
      %70 = arith.mulf %67, %69 : vector<8x256xf32>
      %71 = vector.extract_strided_slice %23 {offsets = [0, 5], sizes = [8, 1], strides = [1, 1]} : vector<8x25xf32> to vector<8x1xf32>
      %72 = vector.broadcast %71 : vector<8x1xf32> to vector<8x256xf32>
      %73 = arith.mulf %70, %72 : vector<8x256xf32>
      %74 = arith.addf %66, %73 : vector<8x256xf32>
      %75 = vector.extract_strided_slice %25 {offsets = [0, 239], sizes = [8, 256], strides = [1, 1]} : vector<8x512xf32> to vector<8x256xf32>
      %76 = vector.extract_strided_slice %24 {offsets = [6, 0], sizes = [1, 256], strides = [1, 1]} : vector<25x256xf32> to vector<1x256xf32>
      %77 = vector.broadcast %76 : vector<1x256xf32> to vector<8x256xf32>
      %78 = arith.mulf %75, %77 : vector<8x256xf32>
      %79 = vector.extract_strided_slice %23 {offsets = [0, 6], sizes = [8, 1], strides = [1, 1]} : vector<8x25xf32> to vector<8x1xf32>
      %80 = vector.broadcast %79 : vector<8x1xf32> to vector<8x256xf32>
      %81 = arith.mulf %78, %80 : vector<8x256xf32>
      %82 = arith.addf %74, %81 : vector<8x256xf32>
      %83 = vector.extract_strided_slice %25 {offsets = [0, 240], sizes = [8, 256], strides = [1, 1]} : vector<8x512xf32> to vector<8x256xf32>
      %84 = vector.extract_strided_slice %24 {offsets = [7, 0], sizes = [1, 256], strides = [1, 1]} : vector<25x256xf32> to vector<1x256xf32>
      %85 = vector.broadcast %84 : vector<1x256xf32> to vector<8x256xf32>
      %86 = arith.mulf %83, %85 : vector<8x256xf32>
      %87 = vector.extract_strided_slice %23 {offsets = [0, 7], sizes = [8, 1], strides = [1, 1]} : vector<8x25xf32> to vector<8x1xf32>
      %88 = vector.broadcast %87 : vector<8x1xf32> to vector<8x256xf32>
      %89 = arith.mulf %86, %88 : vector<8x256xf32>
      %90 = arith.addf %82, %89 : vector<8x256xf32>
      %91 = vector.extract_strided_slice %25 {offsets = [0, 241], sizes = [8, 256], strides = [1, 1]} : vector<8x512xf32> to vector<8x256xf32>
      %92 = vector.extract_strided_slice %24 {offsets = [8, 0], sizes = [1, 256], strides = [1, 1]} : vector<25x256xf32> to vector<1x256xf32>
      %93 = vector.broadcast %92 : vector<1x256xf32> to vector<8x256xf32>
      %94 = arith.mulf %91, %93 : vector<8x256xf32>
      %95 = vector.extract_strided_slice %23 {offsets = [0, 8], sizes = [8, 1], strides = [1, 1]} : vector<8x25xf32> to vector<8x1xf32>
      %96 = vector.broadcast %95 : vector<8x1xf32> to vector<8x256xf32>
      %97 = arith.mulf %94, %96 : vector<8x256xf32>
      %98 = arith.addf %90, %97 : vector<8x256xf32>
      %99 = vector.extract_strided_slice %25 {offsets = [0, 242], sizes = [8, 256], strides = [1, 1]} : vector<8x512xf32> to vector<8x256xf32>
      %100 = vector.extract_strided_slice %24 {offsets = [9, 0], sizes = [1, 256], strides = [1, 1]} : vector<25x256xf32> to vector<1x256xf32>
      %101 = vector.broadcast %100 : vector<1x256xf32> to vector<8x256xf32>
      %102 = arith.mulf %99, %101 : vector<8x256xf32>
      %103 = vector.extract_strided_slice %23 {offsets = [0, 9], sizes = [8, 1], strides = [1, 1]} : vector<8x25xf32> to vector<8x1xf32>
      %104 = vector.broadcast %103 : vector<8x1xf32> to vector<8x256xf32>
      %105 = arith.mulf %102, %104 : vector<8x256xf32>
      %106 = arith.addf %98, %105 : vector<8x256xf32>
      %107 = vector.extract_strided_slice %25 {offsets = [0, 254], sizes = [8, 256], strides = [1, 1]} : vector<8x512xf32> to vector<8x256xf32>
      %108 = vector.extract_strided_slice %24 {offsets = [10, 0], sizes = [1, 256], strides = [1, 1]} : vector<25x256xf32> to vector<1x256xf32>
      %109 = vector.broadcast %108 : vector<1x256xf32> to vector<8x256xf32>
      %110 = arith.mulf %107, %109 : vector<8x256xf32>
      %111 = vector.extract_strided_slice %23 {offsets = [0, 10], sizes = [8, 1], strides = [1, 1]} : vector<8x25xf32> to vector<8x1xf32>
      %112 = vector.broadcast %111 : vector<8x1xf32> to vector<8x256xf32>
      %113 = arith.mulf %110, %112 : vector<8x256xf32>
      %114 = arith.addf %106, %113 : vector<8x256xf32>
      %115 = vector.extract_strided_slice %25 {offsets = [0, 255], sizes = [8, 256], strides = [1, 1]} : vector<8x512xf32> to vector<8x256xf32>
      %116 = vector.extract_strided_slice %24 {offsets = [11, 0], sizes = [1, 256], strides = [1, 1]} : vector<25x256xf32> to vector<1x256xf32>
      %117 = vector.broadcast %116 : vector<1x256xf32> to vector<8x256xf32>
      %118 = arith.mulf %115, %117 : vector<8x256xf32>
      %119 = vector.extract_strided_slice %23 {offsets = [0, 11], sizes = [8, 1], strides = [1, 1]} : vector<8x25xf32> to vector<8x1xf32>
      %120 = vector.broadcast %119 : vector<8x1xf32> to vector<8x256xf32>
      %121 = arith.mulf %118, %120 : vector<8x256xf32>
      %122 = arith.addf %114, %121 : vector<8x256xf32>
      %123 = vector.extract_strided_slice %24 {offsets = [12, 0], sizes = [1, 256], strides = [1, 1]} : vector<25x256xf32> to vector<1x256xf32>
      %124 = vector.broadcast %123 : vector<1x256xf32> to vector<8x256xf32>
      %125 = arith.mulf %22, %124 : vector<8x256xf32>
      %126 = vector.extract_strided_slice %23 {offsets = [0, 12], sizes = [8, 1], strides = [1, 1]} : vector<8x25xf32> to vector<8x1xf32>
      %127 = vector.broadcast %126 : vector<8x1xf32> to vector<8x256xf32>
      %128 = arith.mulf %125, %127 : vector<8x256xf32>
      %129 = arith.addf %122, %128 : vector<8x256xf32>
      %130 = vector.extract_strided_slice %25 {offsets = [0, 1], sizes = [8, 256], strides = [1, 1]} : vector<8x512xf32> to vector<8x256xf32>
      %131 = vector.extract_strided_slice %24 {offsets = [13, 0], sizes = [1, 256], strides = [1, 1]} : vector<25x256xf32> to vector<1x256xf32>
      %132 = vector.broadcast %131 : vector<1x256xf32> to vector<8x256xf32>
      %133 = arith.mulf %130, %132 : vector<8x256xf32>
      %134 = vector.extract_strided_slice %23 {offsets = [0, 13], sizes = [8, 1], strides = [1, 1]} : vector<8x25xf32> to vector<8x1xf32>
      %135 = vector.broadcast %134 : vector<8x1xf32> to vector<8x256xf32>
      %136 = arith.mulf %133, %135 : vector<8x256xf32>
      %137 = arith.addf %129, %136 : vector<8x256xf32>
      %138 = vector.extract_strided_slice %25 {offsets = [0, 2], sizes = [8, 256], strides = [1, 1]} : vector<8x512xf32> to vector<8x256xf32>
      %139 = vector.extract_strided_slice %24 {offsets = [14, 0], sizes = [1, 256], strides = [1, 1]} : vector<25x256xf32> to vector<1x256xf32>
      %140 = vector.broadcast %139 : vector<1x256xf32> to vector<8x256xf32>
      %141 = arith.mulf %138, %140 : vector<8x256xf32>
      %142 = vector.extract_strided_slice %23 {offsets = [0, 14], sizes = [8, 1], strides = [1, 1]} : vector<8x25xf32> to vector<8x1xf32>
      %143 = vector.broadcast %142 : vector<8x1xf32> to vector<8x256xf32>
      %144 = arith.mulf %141, %143 : vector<8x256xf32>
      %145 = arith.addf %137, %144 : vector<8x256xf32>
      %146 = vector.extract_strided_slice %25 {offsets = [0, 14], sizes = [8, 256], strides = [1, 1]} : vector<8x512xf32> to vector<8x256xf32>
      %147 = vector.extract_strided_slice %24 {offsets = [15, 0], sizes = [1, 256], strides = [1, 1]} : vector<25x256xf32> to vector<1x256xf32>
      %148 = vector.broadcast %147 : vector<1x256xf32> to vector<8x256xf32>
      %149 = arith.mulf %146, %148 : vector<8x256xf32>
      %150 = vector.extract_strided_slice %23 {offsets = [0, 15], sizes = [8, 1], strides = [1, 1]} : vector<8x25xf32> to vector<8x1xf32>
      %151 = vector.broadcast %150 : vector<8x1xf32> to vector<8x256xf32>
      %152 = arith.mulf %149, %151 : vector<8x256xf32>
      %153 = arith.addf %145, %152 : vector<8x256xf32>
      %154 = vector.extract_strided_slice %25 {offsets = [0, 15], sizes = [8, 256], strides = [1, 1]} : vector<8x512xf32> to vector<8x256xf32>
      %155 = vector.extract_strided_slice %24 {offsets = [16, 0], sizes = [1, 256], strides = [1, 1]} : vector<25x256xf32> to vector<1x256xf32>
      %156 = vector.broadcast %155 : vector<1x256xf32> to vector<8x256xf32>
      %157 = arith.mulf %154, %156 : vector<8x256xf32>
      %158 = vector.extract_strided_slice %23 {offsets = [0, 16], sizes = [8, 1], strides = [1, 1]} : vector<8x25xf32> to vector<8x1xf32>
      %159 = vector.broadcast %158 : vector<8x1xf32> to vector<8x256xf32>
      %160 = arith.mulf %157, %159 : vector<8x256xf32>
      %161 = arith.addf %153, %160 : vector<8x256xf32>
      %162 = vector.extract_strided_slice %25 {offsets = [0, 16], sizes = [8, 256], strides = [1, 1]} : vector<8x512xf32> to vector<8x256xf32>
      %163 = vector.extract_strided_slice %24 {offsets = [17, 0], sizes = [1, 256], strides = [1, 1]} : vector<25x256xf32> to vector<1x256xf32>
      %164 = vector.broadcast %163 : vector<1x256xf32> to vector<8x256xf32>
      %165 = arith.mulf %162, %164 : vector<8x256xf32>
      %166 = vector.extract_strided_slice %23 {offsets = [0, 17], sizes = [8, 1], strides = [1, 1]} : vector<8x25xf32> to vector<8x1xf32>
      %167 = vector.broadcast %166 : vector<8x1xf32> to vector<8x256xf32>
      %168 = arith.mulf %165, %167 : vector<8x256xf32>
      %169 = arith.addf %161, %168 : vector<8x256xf32>
      %170 = vector.extract_strided_slice %25 {offsets = [0, 17], sizes = [8, 256], strides = [1, 1]} : vector<8x512xf32> to vector<8x256xf32>
      %171 = vector.extract_strided_slice %24 {offsets = [18, 0], sizes = [1, 256], strides = [1, 1]} : vector<25x256xf32> to vector<1x256xf32>
      %172 = vector.broadcast %171 : vector<1x256xf32> to vector<8x256xf32>
      %173 = arith.mulf %170, %172 : vector<8x256xf32>
      %174 = vector.extract_strided_slice %23 {offsets = [0, 18], sizes = [8, 1], strides = [1, 1]} : vector<8x25xf32> to vector<8x1xf32>
      %175 = vector.broadcast %174 : vector<8x1xf32> to vector<8x256xf32>
      %176 = arith.mulf %173, %175 : vector<8x256xf32>
      %177 = arith.addf %169, %176 : vector<8x256xf32>
      %178 = vector.extract_strided_slice %25 {offsets = [0, 18], sizes = [8, 256], strides = [1, 1]} : vector<8x512xf32> to vector<8x256xf32>
      %179 = vector.extract_strided_slice %24 {offsets = [19, 0], sizes = [1, 256], strides = [1, 1]} : vector<25x256xf32> to vector<1x256xf32>
      %180 = vector.broadcast %179 : vector<1x256xf32> to vector<8x256xf32>
      %181 = arith.mulf %178, %180 : vector<8x256xf32>
      %182 = vector.extract_strided_slice %23 {offsets = [0, 19], sizes = [8, 1], strides = [1, 1]} : vector<8x25xf32> to vector<8x1xf32>
      %183 = vector.broadcast %182 : vector<8x1xf32> to vector<8x256xf32>
      %184 = arith.mulf %181, %183 : vector<8x256xf32>
      %185 = arith.addf %177, %184 : vector<8x256xf32>
      %186 = vector.extract_strided_slice %25 {offsets = [0, 30], sizes = [8, 256], strides = [1, 1]} : vector<8x512xf32> to vector<8x256xf32>
      %187 = vector.extract_strided_slice %24 {offsets = [20, 0], sizes = [1, 256], strides = [1, 1]} : vector<25x256xf32> to vector<1x256xf32>
      %188 = vector.broadcast %187 : vector<1x256xf32> to vector<8x256xf32>
      %189 = arith.mulf %186, %188 : vector<8x256xf32>
      %190 = vector.extract_strided_slice %23 {offsets = [0, 20], sizes = [8, 1], strides = [1, 1]} : vector<8x25xf32> to vector<8x1xf32>
      %191 = vector.broadcast %190 : vector<8x1xf32> to vector<8x256xf32>
      %192 = arith.mulf %189, %191 : vector<8x256xf32>
      %193 = arith.addf %185, %192 : vector<8x256xf32>
      %194 = vector.extract_strided_slice %25 {offsets = [0, 31], sizes = [8, 256], strides = [1, 1]} : vector<8x512xf32> to vector<8x256xf32>
      %195 = vector.extract_strided_slice %24 {offsets = [21, 0], sizes = [1, 256], strides = [1, 1]} : vector<25x256xf32> to vector<1x256xf32>
      %196 = vector.broadcast %195 : vector<1x256xf32> to vector<8x256xf32>
      %197 = arith.mulf %194, %196 : vector<8x256xf32>
      %198 = vector.extract_strided_slice %23 {offsets = [0, 21], sizes = [8, 1], strides = [1, 1]} : vector<8x25xf32> to vector<8x1xf32>
      %199 = vector.broadcast %198 : vector<8x1xf32> to vector<8x256xf32>
      %200 = arith.mulf %197, %199 : vector<8x256xf32>
      %201 = arith.addf %193, %200 : vector<8x256xf32>
      %202 = vector.extract_strided_slice %25 {offsets = [0, 32], sizes = [8, 256], strides = [1, 1]} : vector<8x512xf32> to vector<8x256xf32>
      %203 = vector.extract_strided_slice %24 {offsets = [22, 0], sizes = [1, 256], strides = [1, 1]} : vector<25x256xf32> to vector<1x256xf32>
      %204 = vector.broadcast %203 : vector<1x256xf32> to vector<8x256xf32>
      %205 = arith.mulf %202, %204 : vector<8x256xf32>
      %206 = vector.extract_strided_slice %23 {offsets = [0, 22], sizes = [8, 1], strides = [1, 1]} : vector<8x25xf32> to vector<8x1xf32>
      %207 = vector.broadcast %206 : vector<8x1xf32> to vector<8x256xf32>
      %208 = arith.mulf %205, %207 : vector<8x256xf32>
      %209 = arith.addf %201, %208 : vector<8x256xf32>
      %210 = vector.extract_strided_slice %25 {offsets = [0, 33], sizes = [8, 256], strides = [1, 1]} : vector<8x512xf32> to vector<8x256xf32>
      %211 = vector.extract_strided_slice %24 {offsets = [23, 0], sizes = [1, 256], strides = [1, 1]} : vector<25x256xf32> to vector<1x256xf32>
      %212 = vector.broadcast %211 : vector<1x256xf32> to vector<8x256xf32>
      %213 = arith.mulf %210, %212 : vector<8x256xf32>
      %214 = vector.extract_strided_slice %23 {offsets = [0, 23], sizes = [8, 1], strides = [1, 1]} : vector<8x25xf32> to vector<8x1xf32>
      %215 = vector.broadcast %214 : vector<8x1xf32> to vector<8x256xf32>
      %216 = arith.mulf %213, %215 : vector<8x256xf32>
      %217 = arith.addf %209, %216 : vector<8x256xf32>
      %218 = vector.extract_strided_slice %25 {offsets = [0, 34], sizes = [8, 256], strides = [1, 1]} : vector<8x512xf32> to vector<8x256xf32>
      %219 = vector.extract_strided_slice %24 {offsets = [24, 0], sizes = [1, 256], strides = [1, 1]} : vector<25x256xf32> to vector<1x256xf32>
      %220 = vector.broadcast %219 : vector<1x256xf32> to vector<8x256xf32>
      %221 = arith.mulf %218, %220 : vector<8x256xf32>
      %222 = vector.extract_strided_slice %23 {offsets = [0, 24], sizes = [8, 1], strides = [1, 1]} : vector<8x25xf32> to vector<8x1xf32>
      %223 = vector.broadcast %222 : vector<8x1xf32> to vector<8x256xf32>
      %224 = arith.mulf %221, %223 : vector<8x256xf32>
      %225 = arith.addf %217, %224 : vector<8x256xf32>
      %c0_23 = arith.constant 0 : index
      %c0_24 = arith.constant 0 : index
      %226 = vector.load %arg5[%c0_23, %c0_24] : memref<8x8xf32, #tpu.memory_space<vmem>>, vector<8x8xf32>
      %cst_25 = arith.constant dense<0.000000e+00> : vector<8x256xf32>
      %227 = tpu.matmul %226, %225, %cst_25 {dimension_numbers = #tpu.dot_dimension_numbers<[1], [0], [0], [1], [0, 0, 1, 1], [], []>} : vector<8x8xf32>, vector<8x256xf32>, vector<8x256xf32> -> vector<8x256xf32>
      %c0_26 = arith.constant 0 : index
      %c0_27 = arith.constant 0 : index
      %228 = vector.load %arg6[%c0_26, %c0_27] : memref<8x1xf32, #tpu.memory_space<vmem>>, vector<8x1xf32>
      %229 = vector.broadcast %228 : vector<8x1xf32> to vector<8x256xf32>
      %230 = arith.addf %227, %229 : vector<8x256xf32>
      %231 = arith.negf %230 : vector<8x256xf32>
      %232 = math.exp %231 : vector<8x256xf32>
      %cst_28 = arith.constant 1.000000e+00 : f32
      %233 = vector.broadcast %cst_28 : f32 to vector<8x256xf32>
      %234 = arith.addf %233, %232 : vector<8x256xf32>
      %235 = arith.divf %233, %234 : vector<8x256xf32>
      %236 = arith.mulf %230, %235 : vector<8x256xf32>
      %c0_29 = arith.constant 0 : index
      %c0_30 = arith.constant 0 : index
      %c0_31 = arith.constant 0 : index
      %237 = vector.load %arg7[%c0_29, %c0_30, %c0_31] : memref<1x8x256xf32, #tpu.memory_space<vmem>>, vector<1x8x256xf32>
      %238 = vector.shape_cast %237 : vector<1x8x256xf32> to vector<8x256xf32>
      %239 = vector.shape_cast %236 : vector<8x256xf32> to vector<1x8x256xf32>
      tpu.vector_store %arg7[%c0_29, %c0_30, %c0_31], %239 {strides = array<i32>} : memref<1x8x256xf32, #tpu.memory_space<vmem>>, vector<1x8x256xf32>,
    } else {
    }
    return
  }
  func.func @transform_0(%arg0: i32, %arg1: i32) -> (i32, i32, i32, i32) {
    %c0_i32 = arith.constant 0 : i32
    %c0_i32_0 = arith.constant 0 : i32
    %c0_i32_1 = arith.constant 0 : i32
    return %arg0, %arg1, %c0_i32, %c0_i32_0 : i32, i32, i32, i32
  }
  func.func @transform_1(%arg0: i32, %arg1: i32) -> (i32, i32) {
    %c0_i32 = arith.constant 0 : i32
    %c0_i32_0 = arith.constant 0 : i32
    %c0_i32_1 = arith.constant 0 : i32
    return %c0_i32, %c0_i32_0 : i32, i32
  }
  func.func @transform_2(%arg0: i32, %arg1: i32) -> (i32, i32) {
    %c0_i32 = arith.constant 0 : i32
    %c0_i32_0 = arith.constant 0 : i32
    %c0_i32_1 = arith.constant 0 : i32
    return %c0_i32, %c0_i32_0 : i32, i32
  }
  func.func @transform_3(%arg0: i32, %arg1: i32) -> (i32, i32) {
    %c0_i32 = arith.constant 0 : i32
    %c0_i32_0 = arith.constant 0 : i32
    %c0_i32_1 = arith.constant 0 : i32
    return %c0_i32, %c0_i32_0 : i32, i32
  }
  func.func @transform_4(%arg0: i32, %arg1: i32) -> (i32, i32) {
    %c0_i32 = arith.constant 0 : i32
    %c0_i32_0 = arith.constant 0 : i32
    %c0_i32_1 = arith.constant 0 : i32
    return %c0_i32, %c0_i32_0 : i32, i32
  }
  func.func @transform_5(%arg0: i32, %arg1: i32) -> (i32, i32, i32) {
    %c0_i32 = arith.constant 0 : i32
    %c0_i32_0 = arith.constant 0 : i32
    %c0_i32_1 = arith.constant 0 : i32
    return %arg0, %c0_i32, %c0_i32_0 : i32, i32, i32
  }
}

</mosaic_0001>

<bundles_post_ra>
// kernel: tpu_custom_call.1
= control target key start
LH: loop header
LB: loop body
LE: loop exit
PB: predicated region body
PF: predicated region fallthrough
CT: control target
= control target key end

     0   :  { %10 = vsyncpa [#allocation4], 0  ;;  %s3033_s0 = inlined_call_operand.hbm [shape: f32[2,3,8,256], index: 0, kind: input, shape index: {}]   ;;  %s3034_s1 = inlined_call_operand.hbm [shape: f32[25,256], index: 1, kind: input, shape index: {}]   ;;  %s3035_s2 = inlined_call_operand.vmem [shape: f32[8,25], index: 2, kind: input, shape index: {}]   ;;  %s3036_s3 = inlined_call_operand.vmem [shape: f32[8,8], index: 3, kind: input, shape index: {}]   ;;  %s3037_s4 = inlined_call_operand.vmem [shape: f32[8,1], index: 4, kind: input, shape index: {}]   ;;  %s3038_s5 = inlined_call_operand.hbm [shape: f32[2,8,256], index: 5, kind: output, shape index: {}]  }
   0x1   :  { %12 = vsyncpa [#allocation4 + $0x1], 0 }
   0x2   :  { %13 = vsyncpa [#allocation7], 0 }
   0x3   :  { %14 = vsyncpa [#allocation5], 0 }
   0x4   :  { %16 = vsyncpa [#allocation5 + $0x1], 0  ;;  %s2117_s18 = smov 0   ;;  %s2119_s19 = smov 0  }
   0x5   :  { %s2121_s20 = smov 0   ;;  %s2123_s21 = smov 0  }
   0x6   :  { %s2125_s22 = smov 0   ;;  %s2127_s23 = smov 0  }
   0x7 LB: > { %s1669_s24 = sadd.s32 4294967295, %s2014_s23   ;;  %s1670_s25 = sadd.s32 4294967294, %s2014_s23   ;;  %s2014_s23 = sphi %s2127_s23, %s22_s23   ;;  %s2010_s22 = sphi %s2125_s22, %s3063_s22   ;;  %s2006_s21 = sphi %s2123_s21, %s3062_s21   ;;  %s2002_s20 = sphi %s2121_s20, %s3061_s20   ;;  %s1998_s19 = sphi %s2119_s19, %s3060_s19   ;;  %s1994_s18 = sphi %s2117_s18, %s3059_s18  }
   0x8   : > { %p56_p0 = scmp.ne.s32.totalorder %s1998_s19, %s1994_s18  ;;  %p2151_p1 = scmp.eq.s32.totalorder %s1669_s24, 0 }
   0x9   : > { %p2155_p2 = scmp.eq.s32.totalorder %s1669_s24, 1  ;;  %p170_p3 = scmp.eq.s32.totalorder %s1670_s25, 1 }
   0xa   : > { %s3044_s26 = scalar_select %p2151_p1, 1, 0 }
   0xb   : > { %s3045_s27 = scalar_select %p2155_p2, 1, 0 }
   0xc   : > { %p2161_p4 = por %p2151_p1, %p56_p0  ;;  %p1671_p5 = scmp.ge.s32.totalorder %s2014_s23, 1 }
   0xd   : > { %p2166_p6 = por %p170_p3, %p56_p0  ;;  %p177_p7 = scmp.lt.s32.totalorder %s2014_s23, 3 }
   0xe   : > { %s3046_s28 = scalar_select %p2161_p4, 1, 0 }
   0xf   : > { %s3047_s29 = scalar_select %p2166_p6, 1, 0 }
  0x10   : > { %p2171_p8 = pnand %p1671_p5, %p177_p7  ;;  %s2016_s6 = smov [#allocation6]  }
  0x11   : > { %s189_s7 = sshll.u32 %s2016_s6, 4  ;;  %s34_s9 = sadd.s32 1, %s2010_s22  ;;  %s190_s7 = int_to_ptr.vmem [resolvable:$true] %s189_s7 }
  0x12   : > { %s3048_s30 = scalar_select %p2171_p8, 1, 0 }
  0x13   : > { %p1704_p9 = pneg %p2171_p8  ;;  %s1870_s12 = scalar_lea.hbm %s3034_s1, 1024 }
  0x14   : > { %p1871_p12 = scmp.ne.s32.totalorder %s3034_s1, %s1870_s12  ;;  %p1877_p5 = scmp.lt.u32.totalorder %s1870_s12, %s3034_s1 }
  0x15   : > { %p2180_p11 = pnand %p1704_p9, %p2151_p1 }
  0x17   : > { %p1872_p13 = pneg %p2180_p11 }
  0x19   : > { %p1873_p0 = pnand %p1872_p13, %p1871_p12 }
  0x1b   : > { %p1874_p3 = pneg %p1873_p0 }
  0x1d   : > { %p1879_p7 = pnand %p1877_p5, %p1874_p3 }
  0x1f   : > { %1882 = shalt.err (!%p1879_p7)
}
  0x20   : > { %s1883_s17 = scalar_lea.vmem %s190_s7, 1024  ;;  %p1891_p1 = scmp.lt.s32.totalorder %s190_s7, %s190_s7 }
  0x21   : > { %p1884_p9 = scmp.ne.s32.totalorder %s190_s7, %s1883_s17  ;;  %p1892_p4 = scmp.lt.s32.totalorder %s1883_s17, %s1883_s17 }
  0x23   : > { %p1886_p10 = pnand %p1884_p9, %p1872_p13  ;;  %p1893_p8 = por %p1892_p4, %p1891_p1 }
  0x25   : > { %p1887_p6 = pneg %p1886_p10 }
  0x27   : > { %p1894_p2 = pnand %p1893_p8, %p1887_p6 }
  0x29   : > { %1897 = shalt.err (!%p1894_p2)
}
  0x2a   : > { %s3043_s24 = smov 256   ;;  %s2018_s25 = smov 16  }
  0x2b   : > { %1707 = dma.hbm_to_vmem [thread:$0]  (!%p2180_p11), %s3034_s1, 1024, %s190_s7, [#allocation7], %s3043_s24, %s3043_s24, %s2018_s25  }
  0x2c   : > { %p36_p1 = scmp.ge.s32.totalorder %s34_s9, 2  ;;  %s43_s11 = sadd.s32 1, %s2002_s20 }
  0x2d   : > { %p50_p2 = scmp.ne.s32.totalorder %s2002_s20, %s1998_s19  ;;  %p51_p4 = scmp.eq.s32.totalorder %s2014_s23, 0 }
  0x2e   : > { %s3065_s9 = smov (%p36_p1, %s34_s9), 0  ;;  %p3050_p8 = scmp.ne.s32.totalorder %s3045_s27, 0 }
  0x2f   : > { %p52_p6 = por %p51_p4, %p50_p2  ;;  %s38_s8 = ssub.s32 %s2010_s22, %s3065_s9 }
  0x30   : > { %p2212_p10 = por %p3050_p8, %p50_p2  ;;  %p1717_p12 = scmp.lt.s32.totalorder %s2014_s23, 2 }
  0x31   : > { %p41_p13 = scmp.eq.s32.totalorder %s38_s8, 0  ;;  %s212_s13 = sand.u32 1, %s2002_s20  }
  0x32   : > { %s1693_s14 = smul.u32 48, %s212_s13  ;;  %p2224_p11 = pnand %p1717_p12, %p52_p6 }
  0x33   : > { %s2221_s15 = scalar_select %p41_p13, %s2002_s20, %s43_s11  }
  0x34   : > { %s1694_s7 = smul.u32 768, %s2010_s22  ;;  %s216_s16 = scalar_lea.vmem [#allocation3], %s1693_s14 }
  0x35   : > { %s226_s17 = sshll.u32 %s216_s16, 4  ;;  %s2235_s11 = scalar_lea.sflag [#allocation4], %s212_s13  ;;  %s2233_s17 = int_to_ptr.vmem [resolvable:$true] %s226_s17 }
  0x36   : > { %s2231_s24 = scalar_lea.hbm %s3033_s0, %s1694_s7  ;;  %p1900_p3 = pneg %p2224_p11 }
  0x37   : > { %s1898_s8 = scalar_lea.hbm %s2231_s24, 768  ;;  %s1903_s7 = scalar_lea.hbm %s3033_s0, 1536 }
  0x38   : > { %p1899_p0 = scmp.ne.s32.totalorder %s2231_s24, %s1898_s8  ;;  %p1904_p9 = scmp.lt.u32.totalorder %s2231_s24, %s3033_s0 }
  0x39   : > { %p1905_p1 = scmp.lt.u32.totalorder %s1903_s7, %s1898_s8  ;;  %p1907_p4 = scmp.lt.u32.totalorder %s1898_s8, %s2231_s24 }
  0x3a   : > { %p1901_p5 = pnand %p1900_p3, %p1899_p0 }
  0x3b   : > { %p1906_p2 = por %p1905_p1, %p1904_p9 }
  0x3c   : > { %p1902_p7 = pneg %p1901_p5 }
  0x3d   : > { %p1908_p6 = por %p1907_p4, %p1906_p2 }
  0x3f   : > { %p1909_p8 = pnand %p1908_p6, %p1902_p7 }
  0x41   : > { %1912 = shalt.err (!%p1909_p8)
}
  0x42   : > { %s1913_s13 = scalar_lea.vmem %s2233_s17, 768  ;;  %s2019_s14 = smov [#allocation3]  }
  0x43   : > { %p1914_p12 = scmp.ne.s32.totalorder %s2233_s17, %s1913_s13  ;;  %s1918_s16 = sshll.u32 %s2019_s14, 4  ;;  %s1919_s16 = int_to_ptr.vmem [resolvable:$false] %s1918_s16 }
  0x44   : > { %s1920_s10 = scalar_lea.vmem %s1919_s16, 1536  ;;  %p1921_p5 = scmp.lt.s32.totalorder %s2233_s17, %s1919_s16 }
  0x45   : > { %p1916_p13 = pnand %p1914_p12, %p1900_p3  ;;  %p1922_p9 = scmp.lt.s32.totalorder %s1920_s10, %s1913_s13 }
  0x47   : > { %p1917_p0 = pneg %p1916_p13  ;;  %p1923_p1 = por %p1922_p9, %p1921_p5 }
  0x49   : > { %p1924_p2 = pnand %p1923_p1, %p1917_p0 }
  0x4b   : > { %1927 = shalt.err (!%p1924_p2)
}
  0x4c   : > { %s3053_s8 = smov 256   ;;  %p3054_p3 = scmp.ne.s32.totalorder %s3048_s30, 0 }
  0x4d   : > { %1711 = dma.hbm_to_vmem [thread:$0]  (!%p2224_p11), %s2231_s24, 768, %s2233_s17, %s2235_s11, %s3053_s8, %s3053_s8, %s2018_s25  }
  0x4e   : > { %238 = sbr.rel (%p3054_p3) target bundleno = 926 (0x39e), region = 40  ;;  %s2269_s7 = sand.u32 (!%p3054_p3), 1, %s1998_s19  }
  0x4f   : > { %s1695_s27 = smul.u32 (!%p3054_p3), 48, %s2269_s7  ;;  %s241_s13 = scalar_lea.sflag (!%p3054_p3), [#allocation4], %s2269_s7 }
  0x50   : > { %p3055_p7 = scmp.ne.s32.totalorder (!%p3054_p3), %s3046_s28, 0 }
  0x51   : > { %s2273_s14 = scalar_lea.vmem (!%p3054_p3), [#allocation3], %s1695_s27 }
  0x55   : > { %1981 = dma.done.wait (%p3055_p7), %s241_s13, 768  }
  0x56   : > { %1983 = vsyncadd (%p3055_p7), %s241_s13, 4294966528  ;;  %p3056_p11 = scmp.ne.s32.totalorder %s3044_s26, 0 }
  0x58   : > { %1985 = dma.done.wait (%p3056_p11), [#allocation7], 1024  }
  0x59   : > { %1987 = vsyncadd (%p3056_p11), [#allocation7], 4294966272  ;;  %v316_v0 = vlaneseq  ;;  %v2020_v1 = vmov 3   ;;  %v2021_v2 = vmov 1   ;;  %v2291_v5 = vld [vmem:[%s3035_s2] sm:$0xff]  ;;  %v2299_v8 = vld [vmem:[#allocation6 + $0x8] sm:$0xff] }
  0x5a   : > { %1839 = vset.pattern.permute.xlu1 %v2020_v1  ;;  %1837 = vset.pattern.permute.xlu0 %v2021_v2  ;;  %v2293_v6 = vld [vmem:[#allocation6] sm:$0xff]  ;;  %s2022_s26 = smov 95   ;;  %v2023_v10 = vmov 2   ;;  %v2024_v13 = vmov 14   ;;  %s2025_s28 = smov 96   ;;  %v2026_v16 = vmov 4  }
  0x5b   : > { %v2283_v3 = vshrl.u32 %v316_v0, 7  ;;  %466 = vperm.xlu1 %1839, %v2291_v5   ;;  %372 = vperm.xlu0 %1837, %v2291_v5   ;;  %s2027_s25 = smov 97   ;;  %v2028_v20 = vmov 5   ;;  %v2029_v22 = vmov 6   ;;  %s2030_s17 = smov 98   ;;  %v2031_v25 = vmov 7  }
  0x5c   : > { %s2032_s6 = smov 110   ;;  %v2033_v28 = vmov 8   ;;  %v2034_v31 = vmov 9   ;;  %s2035_s11 = smov 111   ;;  %v2036_v34 = vmov 10   ;;  %v2037_v36 = vmov 11  }
  0x5d   : > { %v2286_v4 = vsub.s32 1, %v2283_v3  ;;  %v2302_v9 = vsub.s32 2, %v2283_v3  ;;  %v2314_v15 = vsub.s32 3, %v2283_v3  ;;  %v2324_v19 = vsub.s32 4, %v2283_v3  ;;  %s2038_s16 = smov 112   ;;  %v2366_v39 = vld [vmem:[#allocation6 + $0x10] sm:$0xff] }
  0x5e   : > { %v2333_v24 = vsub.s32 5, %v2283_v3  ;;  %v2342_v29 = vsub.s32 6, %v2283_v3  ;;  %v2353_v33 = vsub.s32 7, %v2283_v3  ;;  %v2364_v38 = vsub.s32 0, %v2283_v3  ;;  %v2374_v43 = vld [vmem:[#allocation6 + $0x18] sm:$0xff]  ;;  %s2040_s10 = smov 113  }
  0x5f   : > { %v352_v7 = vrot.slane %v2293_v6, %v2286_v4  ;;  %1838 = vset.pattern.permute.xlu0 %v2023_v10  ;;  %v356_v11 = vrot.slane %v2299_v8, %v2286_v4  ;;  %v399_v12 = vrot.slane %v2293_v6, %v2302_v9  ;;  %1850 = vset.pattern.permute.xlu1 %v2024_v13  ;;  %v2039_v42 = vmov 12   ;;  %s2042_s8 = smov 1   ;;  %s2044_s27 = smov 114   ;;  %v1682_v13 = vld [vmem:[#allocation6 + $0x30] ss:$0 sm:$0xff] }
  0x60   : > { %419 = vperm.xlu0 %1838, %v2291_v5   ;;  %v403_v14 = vrot.slane %v2299_v8, %v2302_v9  ;;  %v446_v17 = vrot.slane %v2293_v6, %v2314_v15  ;;  %v450_v18 = vrot.slane %v2299_v8, %v2314_v15  ;;  %v493_v21 = vrot.slane %v2293_v6, %v2324_v19  ;;  %s2045_s13 = smov 2   ;;  %s2046_s30 = smov 126  }
  0x61   : > { %359 = vrot.lane.b32.xlu1 %v352_v7, %s2022_s26  ;;  %v497_v23 = vrot.slane %v2299_v8, %v2324_v19  ;;  %v540_v26 = vrot.slane %v2293_v6, %v2333_v24  ;;  %v544_v27 = vrot.slane %v2299_v8, %v2333_v24  ;;  %v587_v30 = vrot.slane %v2293_v6, %v2342_v29  ;;  %s2049_s24 = smov 127   ;;  %v2423_v7 = vld [vmem:[#allocation6 + $0x20] sm:$0xff] }
  0x62   : > { %v591_v32 = vrot.slane %v2299_v8, %v2342_v29  ;;  %v633_v35 = vrot.slane %v2293_v6, %v2353_v33  ;;  %v637_v37 = vrot.slane %v2299_v8, %v2353_v33  ;;  %v319_v40 = vrot.slane %v2293_v6, %v2364_v38 }
  0x63   : > { %v678_v41 = vrot.slane %v2366_v39, %v2364_v38  ;;  %v323_v44 = vrot.slane %v2299_v8, %v2364_v38  ;;  %v682_v45 = vrot.slane %v2374_v43, %v2364_v38  ;;  %v2041_v46 = vmov 13  }
  0x64   : > { %406 = vrot.lane.b32.xlu0 %v399_v12, %s2025_s28  ;;  %v895_v47 = vrot.slane %v2374_v43, %v2333_v24  ;;  %v725_v48 = vrot.slane %v2366_v39, %v2286_v4  ;;  %v938_v49 = vrot.slane %v2366_v39, %v2342_v29  ;;  %v2043_v50 = vmov 16   ;;  %v2427_v12 = vld [vmem:[#allocation6 + $0x28] sm:$0xff] }
  0x65   : > { %361 = vrot.lane.b32.xlu1 %v356_v11, %s2022_s26  ;;  %1840 = vset.pattern.permute.xlu0 %v2026_v16  ;;  %v729_v51 = vrot.slane %v2374_v43, %v2286_v4  ;;  %v772_v52 = vrot.slane %v2366_v39, %v2302_v9  ;;  %v776_v53 = vrot.slane %v2374_v43, %v2302_v9  ;;  %v2047_v54 = vmov 17  }
  0x66   : > { %v817_v55 = vrot.slane %v2366_v39, %v2314_v15  ;;  %v2048_v56 = vmov 18   ;;  %v821_v57 = vrot.slane %v2374_v43, %v2314_v15  ;;  %v2050_v58 = vmov 19  }
  0x67   : > { %v891_v59 = vrot.slane %v2366_v39, %v2333_v24  ;;  %v2051_v60 = vmov 20   ;;  %v2052_v61 = vmov 15   ;;  %v2053_v62 = vmov 21  }
  0x68   : > { %513 = vperm.xlu0 %1840, %v2291_v5   ;;  %v942_v63 = vrot.slane %v2374_v43, %v2342_v29  ;;  %v2054_v0 = vmov 22   ;;  %v985_v1 = vrot.slane %v2366_v39, %v2353_v33  ;;  %v989_v2 = vrot.slane %v2374_v43, %v2353_v33 }
  0x69   : > { %408 = vrot.lane.b32.xlu1 %v403_v14, %s2025_s28  ;;  %v2056_v3 = vmov 23   ;;  %v1032_v10 = vrot.slane %v2423_v7, %v2364_v38  ;;  %v2057_v11 = vmov 24   ;;  %v1036_v14 = vrot.slane %v2427_v12, %v2364_v38 }
  0x6a   : > { %v2060_v16 = vmov 0   ;;  %vm363_vm0 = vcmask 777216   ;;  %vm457_vm1 = vcmask 793600   ;;  %vm551_vm2 = vcmask 900096  }
  0x6b   : > { %vm575_vm3 = vcmask 916480   ;;  %vm410_vm4 = vcmask 785408   ;;  %vm504_vm5 = vcmask 801792   ;;  %vm736_vm6 = vcmask 932864  }
  0x6c   : > { %1841 = vset.pattern.permute.xlu0 %v2028_v20  ;;  %v1126_v20 = vrot.slane %v2423_v7, %v2302_v9  ;;  %vm598_vm7 = vcmask 908288   ;;  %vm387_vm8 = vcmask 1039360   ;;  %vm689_vm9 = vcmask 924672  }
  0x6d   : > { %453 = vrot.lane.b32.xlu1 %v446_v17, %s2027_s25  ;;  %560 = vperm.xlu0 %1841, %v2291_v5   ;;  %v1079_v17 = vrot.slane %v2423_v7, %v2286_v4  ;;  %vm902_vm10 = vcmask 7168   ;;  %vm434_vm11 = vcmask 1031168   ;;  %vm996_vm12 = vcmask 113664  }
  0x6e   : > { %vm1090_vm13 = vcmask 130048   ;;  %vm949_vm14 = vcmask 15360   ;;  %vm1043_vm15 = vcmask 121856  }
  0x71   : > { %455 = vrot.lane.b32.xlu1 %v450_v18, %s2027_s25  ;;  %1842 = vset.pattern.permute.xlu0 %v2029_v22  ;;  %s2055_s25 = smov 14   ;;  %v1083_v18 = vrot.slane %v2427_v12, %v2286_v4  ;;  %v1678_v22 = vld [vmem:[%s2273_s14 + $0x10] sm:$0xff]  ;;  %v1680_v4 = vld [vmem:[%s2273_s14 + $0x20] sm:$0xff] }
  0x72   : > { %607 = vperm.xlu0 %1842, %v2291_v5  }
  0x75   : > { %500 = vrot.lane.b32.xlu1 %v493_v21, %s2030_s17  ;;  %v284_v21 = vld [vmem:[%s2273_s14] sm:$0xff] }
  0x76   : > { %1843 = vset.pattern.permute.xlu0 %v2031_v25 }
  0x77   : > { %652 = vperm.xlu0 %1843, %v2291_v5  }
  0x79   : > { %502 = vrot.lane.b32.xlu1 %v497_v23, %s2030_s17  ;;  %s2058_s17 = smov 15  }
  0x7b   : > { %1844 = vset.pattern.permute.xlu0 %v2033_v28  ;;  %v291_v28 = vadd.f32 %v1678_v22, %v284_v21  ;;  %v1361_v21 = vrot.slane %v2423_v7, %v2353_v33 }
  0x7c   : > { %698 = vperm.xlu0 %1844, %v2291_v5  }
  0x7d   : > { %547 = vrot.lane.b32.xlu1 %v540_v26, %s2032_s6  ;;  %v1679_v26 = vld [vmem:[%s2273_s14 + $0x18] sm:$0xff] }
  0x80   : > { %1845 = vset.pattern.permute.xlu0 %v2034_v31 }
  0x81   : > { %549 = vrot.lane.b32.xlu1 %v544_v27, %s2032_s6  ;;  %745 = vperm.xlu0 %1845, %v2291_v5   ;;  %v1130_v27 = vrot.slane %v2427_v12, %v2302_v9 }
  0x85   : > { %594 = vrot.lane.b32.xlu1 %v587_v30, %s2035_s11  ;;  %1846 = vset.pattern.permute.xlu0 %v2036_v34  ;;  %v1173_v34 = vrot.slane %v2423_v7, %v2314_v15 }
  0x86   : > { %791 = vperm.xlu0 %1846, %v2291_v5  }
  0x89   : > { %596 = vrot.lane.b32.xlu1 %v591_v32, %s2035_s11  ;;  %v1681_v32 = vld [vmem:[%s2273_s14 + $0x28] sm:$0xff] }
  0x8a   : > { %1847 = vset.pattern.permute.xlu0 %v2037_v36 }
  0x8b   : > { %836 = vperm.xlu0 %1847, %v2291_v5  }
  0x8d   : > { %640 = vrot.lane.b32.xlu1 %v633_v35, %s2038_s16  ;;  %v2454_v35 = vadd.f32 %v1680_v4, %v291_v28  ;;  %v1365_v28 = vrot.slane %v2427_v12, %v2353_v33 }
  0x8f   : > { %1848 = vset.pattern.permute.xlu0 %v2039_v42  ;;  %v1177_v42 = vrot.slane %v2427_v12, %v2314_v15 }
  0x90   : > { %870 = vperm.xlu0 %1848, %v2291_v5  }
  0x91   : > { %642 = vrot.lane.b32.xlu1 %v637_v37, %s2038_s16 }
  0x94   : > { %1849 = vset.pattern.permute.xlu0 %v2041_v46 }
  0x95   : > { %685 = vrot.lane.b32.xlu1 %v678_v41, %s2040_s10  ;;  %911 = vperm.xlu0 %1849, %v2291_v5  }
  0x99   : > { %687 = vrot.lane.b32.xlu1 %v682_v45, %s2040_s10  ;;  %900 = vrot.lane.b32.xlu0 %v895_v47, %s2042_s8  ;;  %s2059_s10 = smov 34  }
  0x9a   : > { %1852 = vset.pattern.permute.xlu0 %v2043_v50  ;;  %v1220_v50 = vrot.slane %v2423_v7, %v2324_v19 }
  0x9d   : > { %732 = vrot.lane.b32.xlu1 %v725_v48, %s2044_s27  ;;  %945 = vrot.lane.b32.xlu0 %v938_v49, %s2045_s13 }
  0xa1   : > { %734 = vrot.lane.b32.xlu1 %v729_v51, %s2044_s27  ;;  %1052 = vperm.xlu0 %1852, %v2291_v5   ;;  %s2062_s27 = smov 17  }
  0xa5   : > { %779 = vrot.lane.b32.xlu1 %v772_v52, %s2046_s30  ;;  %1853 = vset.pattern.permute.xlu0 %v2047_v54  ;;  %v1224_v54 = vrot.slane %v2427_v12, %v2324_v19 }
  0xa6   : > { %1099 = vperm.xlu0 %1853, %v2291_v5  }
  0xa9   : > { %781 = vrot.lane.b32.xlu1 %v776_v53, %s2046_s30 }
  0xaa   : > { %1854 = vset.pattern.permute.xlu0 %v2048_v56 }
  0xab   : > { %1146 = vperm.xlu0 %1854, %v2291_v5  }
  0xad   : > { %824 = vrot.lane.b32.xlu1 %v817_v55, %s2049_s24 }
  0xaf   : > { %1855 = vset.pattern.permute.xlu0 %v2050_v58 }
  0xb0   : > { %1193 = vperm.xlu0 %1855, %v2291_v5  }
  0xb1   : > { %826 = vrot.lane.b32.xlu1 %v821_v57, %s2049_s24 }
  0xb4   : > { %1856 = vset.pattern.permute.xlu0 %v2051_v60 }
  0xb5   : > { %958 = vperm.xlu1 %1850, %v2291_v5   ;;  %1240 = vperm.xlu0 %1856, %v2291_v5  }
  0xb9   : > { %898 = vrot.lane.b32.xlu1 %v891_v59, %s2042_s8  ;;  %1857 = vset.pattern.permute.xlu0 %v2053_v62  ;;  %s2061_s8 = smov 16   ;;  %v1267_v59 = vrot.slane %v2423_v7, %v2333_v24 }
  0xba   : > { %1851 = vset.pattern.permute.xlu1 %v2052_v61  ;;  %1287 = vperm.xlu0 %1857, %v2291_v5  }
  0xbd   : > { %1005 = vperm.xlu1 %1851, %v2291_v5  }
  0xbe   : > { %1858 = vset.pattern.permute.xlu0 %v2054_v0 }
  0xbf   : > { %1334 = vperm.xlu0 %1858, %v2291_v5  }
  0xc1   : > { %947 = vrot.lane.b32.xlu1 %v942_v63, %s2045_s13  ;;  %s2063_s13 = smov 18  }
  0xc3   : > { %1859 = vset.pattern.permute.xlu0 %v2056_v3 }
  0xc4   : > { %1381 = vperm.xlu0 %1859, %v2291_v5  }
  0xc5   : > { %992 = vrot.lane.b32.xlu1 %v985_v1, %s2055_s25  ;;  %v1271_v1 = vrot.slane %v2427_v12, %v2333_v24 }
  0xc8   : > { %1860 = vset.pattern.permute.xlu0 %v2057_v11 }
  0xc9   : > { %994 = vrot.lane.b32.xlu1 %v989_v2, %s2055_s25  ;;  %1428 = vperm.xlu0 %1860, %v2291_v5   ;;  %s2065_s25 = smov 31  }
  0xcd   : > { %1039 = vrot.lane.b32.xlu1 %v1032_v10, %s2058_s17  ;;  %1415 = vrot.lane.b32.xlu0 %v1682_v13, %s2059_s10  ;;  %v1314_v13 = vrot.slane %v2423_v7, %v2342_v29 }
  0xce   : > { %1861 = vset.pattern.permute.xlu0 %v2060_v16  ;;  %v1318_v16 = vrot.slane %v2427_v12, %v2342_v29 }
  0xd1   : > { %1041 = vrot.lane.b32.xlu1 %v1036_v14, %s2058_s17  ;;  %340 = vperm.xlu0 %1861, %v2291_v5   ;;  %v285_v5 = vld [vmem:[%s2273_s14 + $0x8] sm:$0xff]  ;;  %s2064_s14 = smov 30   ;;  %s2066_s17 = smov 125  }
  0xd2   : > { %v292_v31 = vadd.f32 %v1679_v26, %v285_v5 }
  0xd4   : > { %v2458_v37 = vadd.f32 %v1681_v32, %v292_v31  ;;  %v1683_v32 = vld [vmem:[#allocation6 + $0x38] ss:$0 sm:$0xff] }
  0xd5   : > { %1086 = vrot.lane.b32.xlu1 %v1079_v17, %s2061_s8 }
  0xd9   : > { %1088 = vrot.lane.b32.xlu1 %v1083_v18, %s2061_s8  ;;  %s2067_s8 = smov 32  }
  0xda   : > { %v2442_v23 = vpop.permute.xlu1 %466  ;;  %v2444_v25 = vpop.permute.xlu0 %372 }
  0xdd   : > { %1133 = vrot.lane.b32.xlu1 %v1126_v20, %s2062_s27 }
  0xde   : > { %v360_v30 = vpop.permute.xlu1 %359 }
  0xdf   : > { %v2456_v36 = vpop.permute.xlu0 %419  ;;  %v368_v46 = vmul.f32 %v360_v30, %v2458_v37 }
  0xe1   : > { %1135 = vrot.lane.b32.xlu1 %v1130_v27, %s2062_s27  ;;  %v375_v52 = vmul.f32 %v2444_v25, %v368_v46  ;;  %s2068_s27 = smov 124  }
  0xe2   : > { %v2460_v41 = vpop.permute.xlu1 %361 }
  0xe3   : > { %v364_v9 = vsel %vm363_vm0, %v360_v30, %v2460_v41  ;;  %v2470_v48 = vpop.permute.xlu0 %406 }
  0xe4   : > { %v369_v45 = vmul.f32 %v364_v9, %v2454_v35  ;;  %v415_v38 = vmul.f32 %v2470_v48, %v2458_v37 }
  0xe5   : > { %1180 = vrot.lane.b32.xlu1 %v1173_v34, %s2063_s13 }
  0xe6   : > { %v2468_v47 = vpop.permute.xlu1 %408  ;;  %v376_v49 = vmul.f32 %v2444_v25, %v369_v45 }
  0xe7   : > { %v417_v51 = vmul.f32 %v2468_v47, %v2458_v37  ;;  %v2479_v53 = vpop.permute.xlu0 %513 }
  0xe8   : > { %383 = vrot.lane.b32.xlu0 %v376_v49, %s2049_s24  ;;  %v370_v49 = vmul.f32 %v2460_v41, %v2458_v37 }
  0xe9   : > { %1182 = vrot.lane.b32.xlu1 %v1177_v42, %s2063_s13  ;;  %v424_v56 = vmul.f32 %v2456_v36, %v417_v51  ;;  %s2069_s13 = smov 33  }
  0xea   : > { %v454_v15 = vpop.permute.xlu1 %453  ;;  %v377_v41 = vmul.f32 %v2444_v25, %v370_v49 }
  0xeb   : > { %v462_v61 = vmul.f32 %v454_v15, %v2458_v37 }
  0xec   : > { %381 = vrot.lane.b32.xlu0 %v375_v52, %s2049_s24  ;;  %v2487_v57 = vpop.permute.xlu0 %560 }
  0xed   : > { %1227 = vrot.lane.b32.xlu1 %v1220_v50, %s2064_s14  ;;  %v469_v3 = vmul.f32 %v2442_v23, %v462_v61  ;;  %v411_v50 = vsel %vm410_vm4, %v2470_v48, %v2468_v47 }
  0xee   : > { %v2484_v55 = vpop.permute.xlu1 %455 }
  0xef   : > { %v458_v58 = vsel %vm457_vm1, %v454_v15, %v2484_v55  ;;  %v464_v61 = vmul.f32 %v2484_v55, %v2458_v37  ;;  %vm1184_vm1 = vcmask 146432  }
  0xf0   : > { %v463_v60 = vmul.f32 %v458_v58, %v2454_v35  ;;  %432 = vrot.lane.b32.xlu0 %v424_v56, %s2046_s30 }
  0xf1   : > { %1229 = vrot.lane.b32.xlu1 %v1224_v54, %s2064_s14  ;;  %v2498_v0 = vpop.permute.xlu0 %607  ;;  %s2070_s14 = smov 94  }
  0xf2   : > { %v2495_v62 = vpop.permute.xlu1 %500  ;;  %v470_v63 = vmul.f32 %v2442_v23, %v463_v60  ;;  %v422_v60 = vmul.f32 %v2456_v36, %v415_v38 }
  0xf4   : > { %477 = vrot.lane.b32.xlu0 %v470_v63, %s2066_s17 }
  0xf5   : > { %1274 = vrot.lane.b32.xlu1 %v1267_v59, %s2065_s25 }
  0xf6   : > { %v2503_v2 = vpop.permute.xlu1 %502  ;;  %v2506_v10 = vpop.permute.xlu0 %652 }
  0xf7   : > { %v511_v11 = vmul.f32 %v2503_v2, %v2458_v37  ;;  %v505_v48 = vsel %vm504_vm5, %v2495_v62, %v2503_v2  ;;  %vm481_vm5 = vcmask 1022976  }
  0xf8   : > { %475 = vrot.lane.b32.xlu0 %v469_v3, %s2066_s17 }
  0xf9   : > { %1276 = vrot.lane.b32.xlu1 %v1271_v1, %s2065_s25  ;;  %v518_v24 = vmul.f32 %v2479_v53, %v511_v11  ;;  %s2071_s25 = smov 109  }
  0xfa   : > { %v548_v14 = vpop.permute.xlu1 %547 }
  0xfb   : > { %v2516_v17 = vpop.permute.xlu0 %698  ;;  %v556_v29 = vmul.f32 %v548_v14, %v2458_v37 }
  0xfc   : > { %526 = vrot.lane.b32.xlu0 %v518_v24, %s2068_s27 }
  0xfd   : > { %1321 = vrot.lane.b32.xlu1 %v1314_v13, %s2067_s8  ;;  %v563_v30 = vmul.f32 %v2487_v57, %v556_v29  ;;  %v471_v13 = vmul.f32 %v2442_v23, %v464_v61 }
  0xfe   : > { %v2519_v18 = vpop.permute.xlu1 %549 }
  0xff   : > { %v552_v20 = vsel %vm551_vm2, %v548_v14, %v2519_v18  ;;  %v509_v14 = vmul.f32 %v2495_v62, %v2458_v37  ;;  %v558_v62 = vmul.f32 %v2519_v18, %v2458_v37 }
 0x100   : > { %v557_v22 = vmul.f32 %v552_v20, %v2454_v35  ;;  %v2526_v5 = vpop.permute.xlu0 %745 }
 0x101   : > { %1323 = vrot.lane.b32.xlu1 %v1318_v16, %s2067_s8  ;;  %v516_v29 = vmul.f32 %v2479_v53, %v509_v14  ;;  %s2080_s8 = smov 64  }
 0x102   : > { %v2529_v26 = vpop.permute.xlu1 %594  ;;  %v564_v27 = vmul.f32 %v2487_v57, %v557_v22 }
 0x104   : > { %571 = vrot.lane.b32.xlu0 %v564_v27, %s2038_s16 }
 0x105   : > { %1368 = vrot.lane.b32.xlu1 %v1361_v21, %s2069_s13  ;;  %v2535_v4 = vpop.permute.xlu0 %791 }
 0x106   : > { %v2537_v7 = vpop.permute.xlu1 %596 }
 0x107   : > { %v605_v31 = vmul.f32 %v2537_v7, %v2458_v37 }
 0x108   : > { %569 = vrot.lane.b32.xlu0 %v563_v30, %s2038_s16 }
 0x109   : > { %1370 = vrot.lane.b32.xlu1 %v1365_v28, %s2069_s13  ;;  %v612_v34 = vmul.f32 %v2498_v0, %v605_v31  ;;  %v599_v28 = vsel %vm598_vm7, %v2529_v26, %v2537_v7  ;;  %s2082_s13 = smov 62  }
 0x10a   : > { %v641_v9 = vpop.permute.xlu1 %640  ;;  %v2544_v42 = vpop.permute.xlu0 %836 }
 0x10b   : > { %v648_v51 = vmul.f32 %v641_v9, %v2458_v37 }
 0x10c   : > { %620 = vrot.lane.b32.xlu0 %v612_v34, %s2035_s11 }
 0x10d   : > { %1417 = vrot.lane.b32.xlu1 %v1683_v32, %s2059_s10  ;;  %v655_v54 = vmul.f32 %v2506_v10, %v648_v51  ;;  %v565_v32 = vmul.f32 %v2487_v57, %v558_v62 }
 0x10e   : > { %v2548_v33 = vpop.permute.xlu1 %642 }
 0x10f   : > { %v644_v12 = vsel %vm575_vm3, %v641_v9, %v2548_v33  ;;  %v2556_v45 = vpop.permute.xlu0 %870  ;;  %v866_v9 = vrot.slane %v2374_v43, %v2324_v19 }
 0x110   : > { %v649_v46 = vmul.f32 %v644_v12, %v2454_v35 }
 0x111   : > { %326 = vrot.lane.b32.xlu1 %v319_v40, %s2070_s14  ;;  %v416_v40 = vmul.f32 %v411_v50, %v2454_v35 }
 0x112   : > { %v2565_v15 = vpop.permute.xlu1 %685  ;;  %v656_v52 = vmul.f32 %v2506_v10, %v649_v46  ;;  %v603_v46 = vmul.f32 %v2529_v26, %v2458_v37 }
 0x114   : > { %663 = vrot.lane.b32.xlu0 %v656_v52, %s2032_s6  ;;  %v2573_v6 = vpop.permute.xlu0 %911  ;;  %v868_v52 = vmul.f32 %v866_v9, %v2458_v37  ;;  %v610_v26 = vmul.f32 %v2498_v0, %v603_v46 }
 0x115   : > { %328 = vrot.lane.b32.xlu1 %v323_v44, %s2070_s14  ;;  %v423_v44 = vmul.f32 %v2456_v36, %v416_v40  ;;  %v510_v36 = vmul.f32 %v505_v48, %v2454_v35  ;;  %v650_v40 = vmul.f32 %v2548_v33, %v2458_v37 }
 0x116   : > { %v2577_v47 = vpop.permute.xlu1 %687 }
 0x117   : > { %v696_v56 = vmul.f32 %v2577_v47, %v2458_v37  ;;  %v517_v16 = vmul.f32 %v2479_v53, %v510_v36  ;;  %v604_v53 = vmul.f32 %v599_v28, %v2454_v35 }
 0x118   : > { %661 = vrot.lane.b32.xlu0 %v655_v54, %s2032_s6  ;;  %v2584_v8 = vpop.permute.xlu0 %900 }
 0x119   : > { %385 = vrot.lane.b32.xlu1 %v377_v41, %s2049_s24  ;;  %v703_v25 = vmul.f32 %v2516_v17, %v696_v56  ;;  %s2072_s24 = smov 108   ;;  %v611_v57 = vmul.f32 %v2498_v0, %v604_v53  ;;  %v690_v41 = vsel %vm689_vm9, %v2565_v15, %v2577_v47  ;;  %v657_v0 = vmul.f32 %v2506_v10, %v650_v40 }
 0x11a   : > { %v733_v58 = vpop.permute.xlu1 %732  ;;  %v695_v33 = vmul.f32 %v690_v41, %v2454_v35  ;;  %v862_v53 = vrot.slane %v2366_v39, %v2324_v19  ;;  %v909_v41 = vmul.f32 %v2584_v8, %v2454_v35  ;;  %vm1278_vm9 = vcmask 252928  }
 0x11b   : > { %v741_v24 = vmul.f32 %v733_v58, %v2458_v37 }
 0x11c   : > { %711 = vrot.lane.b32.xlu0 %v703_v25, %s2071_s25  ;;  %v2592_v59 = vpop.permute.xlu0 %945  ;;  %v702_v61 = vmul.f32 %v2516_v17, %v695_v33  ;;  %v916_v33 = vmul.f32 %v2573_v6, %v909_v41 }
 0x11d   : > { %430 = vrot.lane.b32.xlu1 %v423_v44, %s2046_s30  ;;  %v748_v21 = vmul.f32 %v2526_v5, %v741_v24  ;;  %v874_v44 = vmul.f32 %v2556_v45, %v868_v52  ;;  %v954_v10 = vmul.f32 %v2592_v59, %v2454_v35 }
 0x11e   : > { %v2599_v63 = vpop.permute.xlu1 %734 }
 0x11f   : > { %v737_v1 = vsel %vm736_vm6, %v733_v58, %v2599_v63  ;;  %vm1137_vm6 = vcmask 138240  }
 0x120   : > { %v742_v3 = vmul.f32 %v737_v1, %v2454_v35  ;;  %v2604_v11 = vpop.permute.xlu0 %1052 }
 0x121   : > { %428 = vrot.lane.b32.xlu1 %v422_v60, %s2046_s30  ;;  %v694_v60 = vmul.f32 %v2565_v15, %v2458_v37  ;;  %v743_v15 = vmul.f32 %v2599_v63, %v2458_v37  ;;  %s2076_s30 = smov 79  }
 0x122   : > { %v2609_v55 = vpop.permute.xlu1 %779  ;;  %v749_v2 = vmul.f32 %v2526_v5, %v742_v3 }
 0x124   : > { %756 = vrot.lane.b32.xlu0 %v749_v2, %s2072_s24 }
 0x125   : > { %479 = vrot.lane.b32.xlu1 %v471_v13, %s2066_s17  ;;  %v2617_v20 = vpop.permute.xlu0 %1099  ;;  %v701_v13 = vmul.f32 %v2516_v17, %v694_v60  ;;  %v750_v17 = vmul.f32 %v2526_v5, %v743_v15  ;;  %v787_v5 = vmul.f32 %v2609_v55, %v2458_v37  ;;  %s2079_s17 = smov 76  }
 0x126   : > { %v2619_v23 = vpop.permute.xlu1 %781 }
 0x127   : > { %v789_v22 = vmul.f32 %v2619_v23, %v2458_v37  ;;  %v783_v36 = vsel %vm434_vm11, %v2609_v55, %v2619_v23 }
 0x128   : > { %754 = vrot.lane.b32.xlu0 %v748_v21, %s2072_s24  ;;  %v788_v63 = vmul.f32 %v783_v36, %v2454_v35 }
 0x129   : > { %524 = vrot.lane.b32.xlu1 %v517_v16, %s2068_s27  ;;  %v796_v27 = vmul.f32 %v2535_v4, %v789_v22 }
 0x12a   : > { %v825_v30 = vpop.permute.xlu1 %824  ;;  %v2633_v31 = vpop.permute.xlu0 %1146 }
 0x12b   : > { %v832_v49 = vmul.f32 %v825_v30, %v2458_v37 }
 0x12c   : > { %804 = vrot.lane.b32.xlu0 %v796_v27, %s2025_s28  ;;  %v795_v27 = vmul.f32 %v2535_v4, %v788_v63 }
 0x12d   : > { %522 = vrot.lane.b32.xlu1 %v516_v29, %s2068_s27  ;;  %v839_v56 = vmul.f32 %v2544_v42, %v832_v49  ;;  %v867_v49 = vmul.f32 %v862_v53, %v2454_v35  ;;  %s2081_s27 = smov 63  }
 0x12e   : > { %v2639_v34 = vpop.permute.xlu1 %826 }
 0x12f   : > { %v828_v18 = vsel %vm387_vm8, %v825_v30, %v2639_v34  ;;  %v2644_v7 = vpop.permute.xlu0 %1193  ;;  %v834_v55 = vmul.f32 %v2639_v34, %v2458_v37 }
 0x130   : > { %v833_v12 = vmul.f32 %v828_v18, %v2454_v35  ;;  %v794_v18 = vmul.f32 %v2535_v4, %v787_v5 }
 0x131   : > { %573 = vrot.lane.b32.xlu1 %v565_v32, %s2038_s16  ;;  %s2075_s16 = smov 80   ;;  %v841_v19 = vmul.f32 %v2544_v42, %v834_v55 }
 0x132   : > { %v840_v51 = vmul.f32 %v2544_v42, %v833_v12 }
 0x134   : > { %v2653_v50 = vpop.permute.xlu1 %958  ;;  %847 = vrot.lane.b32.xlu0 %v840_v51, %s2022_s26  ;;  %v2659_v43 = vpop.permute.xlu0 %1240  ;;  %v873_v51 = vmul.f32 %v2556_v45, %v867_v49 }
 0x135   : > { %618 = vrot.lane.b32.xlu1 %v611_v57, %s2035_s11  ;;  %v961_v14 = vmul.f32 %v2653_v50, %v954_v10 }
 0x138   : > { %v2666_v54 = vpop.permute.xlu1 %898  ;;  %845 = vrot.lane.b32.xlu0 %v839_v56, %s2022_s26 }
 0x139   : > { %v903_v38 = vsel %vm902_vm10, %v2666_v54, %v2584_v8  ;;  %616 = vrot.lane.b32.xlu1 %v610_v26, %s2035_s11  ;;  %v2676_v25 = vpop.permute.xlu0 %1287  ;;  %s2074_s11 = smov 92   ;;  %v907_v52 = vmul.f32 %v2666_v54, %v2454_v35  ;;  %vm1231_vm10 = vcmask 244736  }
 0x13a   : > { %v908_v47 = vmul.f32 %v903_v38, %v2458_v37 }
 0x13b   : > { %v914_v56 = vmul.f32 %v2573_v6, %v907_v52 }
 0x13c   : > { %v2679_v58 = vpop.permute.xlu1 %1005  ;;  %879 = vrot.lane.b32.xlu0 %v874_v44, %s2070_s14  ;;  %v915_v1 = vmul.f32 %v2573_v6, %v908_v47 }
 0x13d   : > { %665 = vrot.lane.b32.xlu1 %v657_v0, %s2032_s6  ;;  %s2073_s6 = smov 93  }
 0x13e   : > { %v2691_v3 = vpop.permute.xlu0 %1334 }
 0x140   : > { %v2688_v48 = vpop.permute.xlu1 %947  ;;  %922 = vrot.lane.b32.xlu0 %v915_v1, %s2073_s6 }
 0x141   : > { %709 = vrot.lane.b32.xlu1 %v702_v61, %s2071_s25  ;;  %v956_v24 = vmul.f32 %v2688_v48, %v2454_v35  ;;  %v950_v45 = vsel %vm949_vm14, %v2592_v59, %v2688_v48  ;;  %vm330_vm14 = vcmask 769024  }
 0x142   : > { %v955_v8 = vmul.f32 %v950_v45, %v2458_v37 }
 0x143   : > { %v2707_v16 = vpop.permute.xlu0 %1381  ;;  %v963_v21 = vmul.f32 %v2653_v50, %v956_v24 }
 0x144   : > { %v2703_v2 = vpop.permute.xlu1 %992  ;;  %967 = vrot.lane.b32.xlu0 %v961_v14, %s2074_s11  ;;  %v962_v48 = vmul.f32 %v2653_v50, %v955_v8 }
 0x145   : > { %707 = vrot.lane.b32.xlu1 %v701_v13, %s2071_s25  ;;  %v1001_v6 = vmul.f32 %v2703_v2, %v2454_v35  ;;  %s2084_s25 = smov 60  }
 0x147   : > { %v1008_v36 = vmul.f32 %v2679_v58, %v1001_v6 }
 0x148   : > { %v2712_v23 = vpop.permute.xlu1 %994  ;;  %971 = vrot.lane.b32.xlu0 %v963_v21, %s2074_s11  ;;  %v2720_v62 = vpop.permute.xlu0 %1428 }
 0x149   : > { %v997_v22 = vsel %vm996_vm12, %v2703_v2, %v2712_v23  ;;  %758 = vrot.lane.b32.xlu1 %v750_v17, %s2072_s24  ;;  %v1003_v24 = vmul.f32 %v2712_v23, %v2454_v35  ;;  %vm1372_vm12 = vcmask 269312  }
 0x14a   : > { %v1002_v29 = vmul.f32 %v997_v22, %v2458_v37 }
 0x14b   : > { %v1010_v21 = vmul.f32 %v2679_v58, %v1003_v24 }
 0x14c   : > { %v2725_v28 = vpop.permute.xlu1 %1039  ;;  %v1009_v30 = vmul.f32 %v2679_v58, %v1002_v29  ;;  %v2738_v46 = vpop.permute.xlu0 %1415 }
 0x14d   : > { %v1048_v32 = vmul.f32 %v2725_v28, %v2454_v35  ;;  %802 = vrot.lane.b32.xlu1 %v795_v27, %s2025_s28 }
 0x14e   : > { %1016 = vrot.lane.b32.xlu0 %v1009_v30, %s2075_s16 }
 0x14f   : > { %v1055_v9 = vmul.f32 %v2604_v11, %v1048_v32 }
 0x150   : > { %v1042_v12 = vpop.permute.xlu1 %1041  ;;  %v2748_v34 = vpop.permute.xlu0 %340 }
 0x151   : > { %v1050_v57 = vmul.f32 %v1042_v12, %v2454_v35  ;;  %800 = vrot.lane.b32.xlu1 %v794_v18, %s2025_s28  ;;  %s2078_s28 = smov 77   ;;  %v1044_v50 = vsel %vm1043_vm15, %v2725_v28, %v1042_v12  ;;  %vm1419_vm15 = vcmask 277504  }
 0x152   : > { %1061 = vrot.lane.b32.xlu0 %v1055_v9, %s2076_s30  ;;  %v1049_v22 = vmul.f32 %v1044_v50, %v2458_v37 }
 0x153   : > { %v1057_v39 = vmul.f32 %v2604_v11, %v1050_v57 }
 0x154   : > { %v1087_v4 = vpop.permute.xlu1 %1086  ;;  %v1056_v30 = vmul.f32 %v2604_v11, %v1049_v22 }
 0x155   : > { %849 = vrot.lane.b32.xlu1 %v841_v19, %s2022_s26  ;;  %s2077_s26 = smov 78   ;;  %v1095_v58 = vmul.f32 %v1087_v4, %v2454_v35 }
 0x156   : > { %1065 = vrot.lane.b32.xlu0 %v1057_v39, %s2076_s30 }
 0x157   : > { %v1102_v55 = vmul.f32 %v2617_v20, %v1095_v58 }
 0x158   : > { %v2753_v26 = vpop.permute.xlu1 %1088 }
 0x159   : > { %v1091_v42 = vsel %vm1090_vm13, %v1087_v4, %v2753_v26  ;;  %877 = vrot.lane.b32.xlu1 %v873_v51, %s2070_s14  ;;  %v1097_v9 = vmul.f32 %v2753_v26, %v2454_v35  ;;  %vm1325_vm13 = vcmask 261120   ;;  %s2083_s14 = smov 61  }
 0x15a   : > { %v1096_v40 = vmul.f32 %v1091_v42, %v2458_v37  ;;  %v2764_v44 = vpop.permute.xlu0 %383 }
 0x15b   : > { %v1104_v19 = vmul.f32 %v2617_v20, %v1097_v9 }
 0x15c   : > { %v1103_v38 = vmul.f32 %v2617_v20, %v1096_v40  ;;  %v1134_v54 = vpop.permute.xlu1 %1133 }
 0x15d   : > { %v1142_v0 = vmul.f32 %v1134_v54, %v2454_v35  ;;  %920 = vrot.lane.b32.xlu1 %v914_v56, %s2073_s6 }
 0x15e   : > { %1110 = vrot.lane.b32.xlu0 %v1103_v38, %s2077_s26  ;;  %v382_v59 = vpop.permute.xlu0 %381 }
 0x15f   : > { %v1149_v47 = vmul.f32 %v2633_v31, %v1142_v0  ;;  %v2775_v10 = vsel %vm387_vm8, %v382_v59, %v2764_v44 }
 0x160   : > { %v1136_v60 = vpop.permute.xlu1 %1135 }
 0x161   : > { %v1144_v61 = vmul.f32 %v1136_v60, %v2454_v35  ;;  %924 = vrot.lane.b32.xlu1 %v916_v33, %s2073_s6  ;;  %v1138_v12 = vsel %vm1137_vm6, %v1134_v54, %v1136_v60  ;;  %vm1208_vm6 = vcmask 621568  }
 0x162   : > { %1155 = vrot.lane.b32.xlu0 %v1149_v47, %s2078_s28  ;;  %v2783_v15 = vpop.permute.xlu0 %432  ;;  %v1143_v39 = vmul.f32 %v1138_v12, %v2458_v37 }
 0x163   : > { %v1151_v1 = vmul.f32 %v2633_v31, %v1144_v61 }
 0x164   : > { %v1181_v13 = vpop.permute.xlu1 %1180  ;;  %v1150_v42 = vmul.f32 %v2633_v31, %v1143_v39 }
 0x165   : > { %969 = vrot.lane.b32.xlu1 %v962_v48, %s2074_s11  ;;  %v1189_v40 = vmul.f32 %v1181_v13, %v2454_v35 }
 0x166   : > { %1159 = vrot.lane.b32.xlu0 %v1151_v1, %s2078_s28  ;;  %v2791_v2 = vpop.permute.xlu0 %477 }
 0x167   : > { %v1196_v31 = vmul.f32 %v2644_v7, %v1189_v40 }
 0x168   : > { %v1183_v14 = vpop.permute.xlu1 %1182 }
 0x169   : > { %v1185_v17 = vsel %vm1184_vm1, %v1181_v13, %v1183_v14  ;;  %1014 = vrot.lane.b32.xlu1 %v1008_v36, %s2075_s16  ;;  %v1191_v54 = vmul.f32 %v1183_v14, %v2454_v35  ;;  %vm1114_vm1 = vcmask 637952  }
 0x16a   : > { %v1190_v63 = vmul.f32 %v1185_v17, %v2458_v37  ;;  %v476_v27 = vpop.permute.xlu0 %475 }
 0x16b   : > { %v2801_v28 = vsel %vm481_vm5, %v476_v27, %v2791_v2  ;;  %v1198_v60 = vmul.f32 %v2644_v7, %v1191_v54 }
 0x16c   : > { %v1197_v29 = vmul.f32 %v2644_v7, %v1190_v63  ;;  %v1228_v5 = vpop.permute.xlu1 %1227  ;;  %v1424_v63 = vmul.f32 %v2738_v46, %v2454_v35 }
 0x16d   : > { %v1236_v23 = vmul.f32 %v1228_v5, %v2454_v35  ;;  %1018 = vrot.lane.b32.xlu1 %v1010_v21, %s2075_s16 }
 0x16e   : > { %1204 = vrot.lane.b32.xlu0 %v1197_v29, %s2079_s17  ;;  %v2815_v57 = vpop.permute.xlu0 %526 }
 0x16f   : > { %v1243_v32 = vmul.f32 %v2659_v43, %v1236_v23 }
 0x170   : > { %v1230_v53 = vpop.permute.xlu1 %1229 }
 0x171   : > { %v1238_v18 = vmul.f32 %v1230_v53, %v2454_v35  ;;  %1063 = vrot.lane.b32.xlu1 %v1056_v30, %s2076_s30  ;;  %v1232_v33 = vsel %vm1231_vm10, %v1228_v5, %v1230_v53  ;;  %v1431_v30 = vmul.f32 %v2720_v62, %v1424_v63  ;;  %vm1302_vm10 = vcmask 515072   ;;  %s1692_s30 = sshll.u32 %s2006_s21, 8 }
 0x172   : > { %1249 = vrot.lane.b32.xlu0 %v1243_v32, %s2080_s8  ;;  %v1237_v59 = vmul.f32 %v1232_v33, %v2458_v37 }
 0x173   : > { %v1245_v11 = vmul.f32 %v2659_v43, %v1238_v18 }
 0x174   : > { %v1275_v49 = vpop.permute.xlu1 %1274  ;;  %v1244_v1 = vmul.f32 %v2659_v43, %v1237_v59 }
 0x175   : > { %1108 = vrot.lane.b32.xlu1 %v1102_v55, %s2077_s26  ;;  %v1283_v13 = vmul.f32 %v1275_v49, %v2454_v35 }
 0x176   : > { %1253 = vrot.lane.b32.xlu0 %v1245_v11, %s2080_s8  ;;  %v2821_v51 = vpop.permute.xlu0 %571 }
 0x177   : > { %v1290_v14 = vmul.f32 %v2676_v25, %v1283_v13 }
 0x178   : > { %v1277_v4 = vpop.permute.xlu1 %1276 }
 0x179   : > { %v1279_v52 = vsel %vm1278_vm9, %v1275_v49, %v1277_v4  ;;  %1112 = vrot.lane.b32.xlu1 %v1104_v19, %s2077_s26  ;;  %v1285_v17 = vmul.f32 %v1277_v4, %v2454_v35  ;;  %vm1255_vm9 = vcmask 523264  }
 0x17a   : > { %v1284_v26 = vmul.f32 %v1279_v52, %v2458_v37  ;;  %v570_v45 = vpop.permute.xlu0 %569 }
 0x17b   : > { %v2831_v38 = vsel %vm575_vm3, %v570_v45, %v2821_v51  ;;  %v1292_v27 = vmul.f32 %v2676_v25, %v1285_v17 }
 0x17c   : > { %v1291_v41 = vmul.f32 %v2676_v25, %v1284_v26  ;;  %v1322_v56 = vpop.permute.xlu1 %1321 }
 0x17d   : > { %v1330_v20 = vmul.f32 %v1322_v56, %v2454_v35  ;;  %1157 = vrot.lane.b32.xlu1 %v1150_v42, %s2078_s28 }
 0x17e   : > { %1298 = vrot.lane.b32.xlu0 %v1291_v41, %s2081_s27  ;;  %v2844_v48 = vpop.permute.xlu0 %620 }
 0x17f   : > { %v1337_v0 = vmul.f32 %v2691_v3, %v1330_v20 }
 0x180   : > { %v1324_v8 = vpop.permute.xlu1 %1323 }
 0x181   : > { %v1332_v47 = vmul.f32 %v1324_v8, %v2454_v35  ;;  %1202 = vrot.lane.b32.xlu1 %v1196_v31, %s2079_s17  ;;  %v1326_v21 = vsel %vm1325_vm13, %v1322_v56, %v1324_v8  ;;  %vm1396_vm13 = vcmask 498688  }
 0x182   : > { %1343 = vrot.lane.b32.xlu0 %v1337_v0, %s2082_s13  ;;  %v1331_v23 = vmul.f32 %v1326_v21, %v2458_v37 }
 0x183   : > { %v1339_v61 = vmul.f32 %v2691_v3, %v1332_v47 }
 0x184   : > { %v1369_v6 = vpop.permute.xlu1 %1368  ;;  %v1338_v18 = vmul.f32 %v2691_v3, %v1331_v23 }
 0x185   : > { %1206 = vrot.lane.b32.xlu1 %v1198_v60, %s2079_s17  ;;  %v1377_v55 = vmul.f32 %v1369_v6, %v2454_v35 }
 0x186   : > { %1347 = vrot.lane.b32.xlu0 %v1339_v61, %s2082_s13  ;;  %v2850_v24 = vpop.permute.xlu0 %663 }
 0x187   : > { %v1384_v3 = vmul.f32 %v2707_v16, %v1377_v55 }
 0x188   : > { %v1371_v36 = vpop.permute.xlu1 %1370 }
 0x189   : > { %v1373_v7 = vsel %vm1372_vm12, %v1369_v6, %v1371_v36  ;;  %1251 = vrot.lane.b32.xlu1 %v1244_v1, %s2080_s8  ;;  %v1379_v4 = vmul.f32 %v1371_v36, %v2454_v35  ;;  %vm1349_vm12 = vcmask 506880  }
 0x18a   : > { %v1378_v50 = vmul.f32 %v1373_v7, %v2458_v37  ;;  %v662_v29 = vpop.permute.xlu0 %661 }
 0x18b   : > { %v2861_v5 = vsel %vm551_vm2, %v662_v29, %v2850_v24  ;;  %v1386_v45 = vmul.f32 %v2707_v16, %v1379_v4 }
 0x18c   : > { %v1385_v43 = vmul.f32 %v2707_v16, %v1378_v50  ;;  %v1418_v22 = vpop.permute.xlu1 %1417 }
 0x18d   : > { %1296 = vrot.lane.b32.xlu1 %v1290_v14, %s2081_s27  ;;  %v1426_v58 = vmul.f32 %v1418_v22, %v2454_v35  ;;  %v1420_v26 = vsel %vm1419_vm15, %v2738_v46, %v1418_v22 }
 0x18e   : > { %1392 = vrot.lane.b32.xlu0 %v1385_v43, %s2083_s14  ;;  %v1425_v20 = vmul.f32 %v1420_v26, %v2458_v37  ;;  %v712_v31 = vpop.permute.xlu0 %711 }
 0x18f   : > { %v1433_v9 = vmul.f32 %v2720_v62, %v1426_v58 }
 0x190   : > { %v327_v32 = vpop.permute.xlu1 %326 }
 0x191   : > { %v335_v53 = vmul.f32 %v327_v32, %v2458_v37  ;;  %1300 = vrot.lane.b32.xlu1 %v1292_v27, %s2081_s27  ;;  %s2984_s27 = scalar_lea.hbm %s3038_s5, %s1692_s30 }
 0x192   : > { %1437 = vrot.lane.b32.xlu0 %v1431_v30, %s2084_s25 }
 0x193   : > { %v343_v25 = vmul.f32 %v2748_v34, %v335_v53 }
 0x194   : > { %v329_v11 = vpop.permute.xlu1 %328 }
 0x195   : > { %v331_v12 = vsel %vm330_vm14, %v327_v32, %v329_v11  ;;  %v337_v49 = vmul.f32 %v329_v11, %v2458_v37  ;;  %1345 = vrot.lane.b32.xlu1 %v1338_v18, %s2082_s13  ;;  %v393_v19 = vadd.f32 %v2775_v10, %v343_v25  ;;  %s1564_s13 = scalar_lea.sflag [#allocation5], %s2269_s7 }
 0x196   : > { %v336_v39 = vmul.f32 %v331_v12, %v2454_v35  ;;  %1441 = vrot.lane.b32.xlu0 %v1433_v9, %s2084_s25  ;;  %v2898_v0 = vpop.permute.xlu0 %756 }
 0x197   : > { %v345_v52 = vmul.f32 %v2748_v34, %v337_v49 }
 0x198   : > { %v386_v42 = vpop.permute.xlu1 %385  ;;  %v344_v40 = vmul.f32 %v2748_v34, %v336_v39 }
 0x199   : > { %v389_v41 = vsel %vm387_vm8, %v2764_v44, %v386_v42  ;;  %v395_v10 = vadd.f32 %v386_v42, %v345_v52  ;;  %1390 = vrot.lane.b32.xlu1 %v1384_v3, %s2083_s14  ;;  %v1432_v44 = vmul.f32 %v2720_v62, %v1425_v20  ;;  %vm528_vm8 = vcmask 1014784  }
 0x19a   : > { %v394_v56 = vadd.f32 %v389_v41, %v344_v40  ;;  %v755_v59 = vpop.permute.xlu0 %754 }
 0x19b   : > { %v442_v35 = vadd.f32 %v2783_v15, %v395_v10 }
 0x19c   : > { %v431_v54 = vpop.permute.xlu1 %430 }
 0x19d   : > { %v436_v46 = vsel %vm434_vm11, %v431_v54, %v2783_v15  ;;  %1394 = vrot.lane.b32.xlu1 %v1386_v45, %s2083_s14  ;;  %s2086_s14 = smov [#allocation8]  }
 0x19e   : > { %v441_v34 = vadd.f32 %v436_v46, %v394_v56  ;;  %v2907_v36 = vpop.permute.xlu0 %804 }
 0x1a0   : > { %v429_v33 = vpop.permute.xlu1 %428 }
 0x1a1   : > { %v435_v8 = vsel %vm434_vm11, %v429_v33, %v431_v54  ;;  %1439 = vrot.lane.b32.xlu1 %v1432_v44, %s2084_s25  ;;  %vm760_vm11 = vcmask 883712   ;;  %s1932_s25 = sshll.u32 %s2086_s14, 4  ;;  %s1933_s25 = int_to_ptr.vmem [resolvable:$false] %s1932_s25 }
 0x1a2   : > { %v440_v37 = vadd.f32 %v435_v8, %v393_v19  ;;  %v761_v4 = vsel %vm760_vm11, %v755_v59, %v2898_v0  ;;  %s1934_s24 = scalar_lea.vmem %s1933_s25, 512 }
 0x1a4   : > { %v480_v16 = vpop.permute.xlu1 %479  ;;  %v487_v47 = vadd.f32 %v2801_v28, %v440_v37 }
 0x1a5   : > { %v483_v60 = vsel %vm481_vm5, %v2791_v2, %v480_v16  ;;  %v489_v15 = vadd.f32 %v480_v16, %v442_v35  ;;  %vm1161_vm5 = vcmask 629760  }
 0x1a6   : > { %v488_v61 = vadd.f32 %v483_v60, %v441_v34  ;;  %v2909_v17 = vpop.permute.xlu0 %847 }
 0x1a7   : > { %v536_v62 = vadd.f32 %v2815_v57, %v489_v15 }
 0x1a8   : > { %v525_v6 = vpop.permute.xlu1 %524 }
 0x1a9   : > { %v530_v1 = vsel %vm528_vm8, %v525_v6, %v2815_v57 }
 0x1aa   : > { %v535_v13 = vadd.f32 %v530_v1, %v488_v61  ;;  %v846_v27 = vpop.permute.xlu0 %845 }
 0x1ac   : > { %v523_v7 = vpop.permute.xlu1 %522 }
 0x1ad   : > { %v529_v50 = vsel %vm528_vm8, %v523_v7, %v525_v6  ;;  %v851_v6 = vsel %vm363_vm0, %v846_v27, %v2909_v17  ;;  %vm1472_vm8 = vcmask 64512  }
 0x1ae   : > { %v534_v14 = vadd.f32 %v529_v50, %v487_v47  ;;  %v2918_v53 = vpop.permute.xlu0 %879 }
 0x1b0   : > { %v574_v28 = vpop.permute.xlu1 %573  ;;  %v581_v2 = vadd.f32 %v2831_v38, %v534_v14 }
 0x1b1   : > { %v577_v63 = vsel %vm575_vm3, %v2821_v51, %v574_v28  ;;  %v583_v21 = vadd.f32 %v574_v28, %v536_v62  ;;  %vm713_vm3 = vcmask 891904  }
 0x1b2   : > { %v582_v43 = vadd.f32 %v577_v63, %v535_v13  ;;  %v923_v12 = vpop.permute.xlu0 %922 }
 0x1b3   : > { %v629_v22 = vadd.f32 %v2844_v48, %v583_v21 }
 0x1b4   : > { %v619_v29 = vpop.permute.xlu1 %618 }
 0x1b5   : > { %v623_v57 = vsel %vm598_vm7, %v619_v29, %v2844_v48 }
 0x1b6   : > { %v628_v23 = vadd.f32 %v623_v57, %v582_v43  ;;  %v968_v52 = vpop.permute.xlu0 %967 }
 0x1b8   : > { %v617_v30 = vpop.permute.xlu1 %616 }
 0x1b9   : > { %v622_v58 = vsel %vm598_vm7, %v617_v30, %v619_v29  ;;  %vm973_vm7 = vcmask 752640  }
 0x1ba   : > { %v627_v32 = vadd.f32 %v622_v58, %v581_v2 }
 0x1bc   : > { %v666_v38 = vpop.permute.xlu1 %665  ;;  %v672_v18 = vadd.f32 %v2861_v5, %v627_v32 }
 0x1bd   : > { %v668_v51 = vsel %vm551_vm2, %v2850_v24, %v666_v38  ;;  %v674_v55 = vadd.f32 %v666_v38, %v629_v22  ;;  %v972_v24 = vpop.permute.xlu0 %971  ;;  %vm926_vm2 = vcmask 760832  }
 0x1be   : > { %v673_v25 = vadd.f32 %v668_v51, %v628_v23 }
 0x1bf   : > { %v721_v9 = vadd.f32 %v712_v31, %v674_v55 }
 0x1c0   : > { %v710_v11 = vpop.permute.xlu1 %709 }
 0x1c1   : > { %v715_v48 = vsel %vm713_vm3, %v710_v11, %v712_v31  ;;  %v1017_v41 = vpop.permute.xlu0 %1016 }
 0x1c2   : > { %v720_v49 = vadd.f32 %v715_v48, %v673_v25 }
 0x1c4   : > { %v708_v19 = vpop.permute.xlu1 %707 }
 0x1c5   : > { %v714_v39 = vsel %vm713_vm3, %v708_v19, %v710_v11  ;;  %v1062_v45 = vpop.permute.xlu0 %1061 }
 0x1c6   : > { %v719_v3 = vadd.f32 %v714_v39, %v672_v18 }
 0x1c8   : > { %v759_v5 = vpop.permute.xlu1 %758  ;;  %v766_v26 = vadd.f32 %v761_v4, %v719_v3 }
 0x1c9   : > { %v1066_v35 = vpop.permute.xlu0 %1065  ;;  %v768_v1 = vadd.f32 %v759_v5, %v721_v9  ;;  %v762_v14 = vsel %vm760_vm11, %v2898_v0, %v759_v5 }
 0x1ca   : > { %v767_v63 = vadd.f32 %v762_v14, %v720_v49 }
 0x1cb   : > { %v813_v21 = vadd.f32 %v2907_v36, %v768_v1 }
 0x1cc   : > { %v803_v42 = vpop.permute.xlu1 %802 }
 0x1cd   : > { %v807_v2 = vsel %vm410_vm4, %v803_v42, %v2907_v36 }
 0x1ce   : > { %v812_v27 = vadd.f32 %v807_v2, %v767_v63 }
 0x1d0   : > { %v801_v40 = vpop.permute.xlu1 %800  ;;  %v2925_v54 = vpop.permute.xlu0 %1110 }
 0x1d1   : > { %v806_v15 = vsel %vm410_vm4, %v801_v40, %v803_v42  ;;  %vm1020_vm4 = vcmask 654336  }
 0x1d2   : > { %v811_v61 = vadd.f32 %v806_v15, %v766_v26 }
 0x1d4   : > { %v850_v10 = vpop.permute.xlu1 %849  ;;  %v2927_v44 = vpop.permute.xlu0 %1155  ;;  %v856_v13 = vadd.f32 %v851_v6, %v811_v61 }
 0x1d5   : > { %v852_v57 = vsel %vm363_vm0, %v2909_v17, %v850_v10  ;;  %v858_v23 = vadd.f32 %v850_v10, %v813_v21  ;;  %vm1067_vm0 = vcmask 646144  }
 0x1d6   : > { %v857_v30 = vadd.f32 %v852_v57, %v812_v27  ;;  %v2085_v27 = vmov 0.0  }
 0x1d7   : > { %v887_v36 = vadd.f32 %v2918_v53, %v858_v23  ;;  %1540 = vmatprep.mubr.f32.mxu0 %v2085_v27 }
 0x1d8   : > { %v878_v56 = vpop.permute.xlu1 %877  ;;  %v2929_v8 = vpop.permute.xlu0 %1159 }
 0x1d9   : > { %v885_v28 = vadd.f32 %v878_v56, %v856_v13  ;;  %v881_v0 = vsel %vm330_vm14, %v878_v56, %v2918_v53  ;;  %vm1443_vm14 = vcmask 490496  }
 0x1da   : > { %v886_v51 = vadd.f32 %v881_v0, %v857_v30 }
 0x1dc   : > { %v921_v20 = vpop.permute.xlu1 %920 }
 0x1dd   : > { %v932_v43 = vadd.f32 %v921_v20, %v885_v28  ;;  %v927_v38 = vsel %vm926_vm2, %v921_v20, %v923_v12 }
 0x1de   : > { %v933_v11 = vadd.f32 %v927_v38, %v886_v51 }
 0x1df   : > { %v979_v58 = vadd.f32 %v968_v52, %v932_v43 }
 0x1e0   : > { %v925_v31 = vpop.permute.xlu1 %924  ;;  %v2931_v16 = vpop.permute.xlu0 %1204 }
 0x1e1   : > { %v928_v18 = vsel %vm926_vm2, %v923_v12, %v925_v31 }
 0x1e2   : > { %v934_v48 = vadd.f32 %v928_v18, %v887_v36 }
 0x1e4   : > { %v970_v46 = vpop.permute.xlu1 %969  ;;  %v2934_v59 = vpop.permute.xlu0 %1249 }
 0x1e5   : > { %v974_v17 = vsel %vm973_vm7, %v968_v52, %v970_v46  ;;  %v975_v9 = vsel %vm973_vm7, %v970_v46, %v972_v24 }
 0x1e6   : > { %v980_v3 = vadd.f32 %v974_v17, %v933_v11  ;;  %v981_v4 = vadd.f32 %v975_v9, %v934_v48  ;;  %v1453_v11 = vld [vmem:[%s3037_s4] sm:$0xff] }
 0x1e8   : > { %v1015_v34 = vpop.permute.xlu1 %1014  ;;  %v2938_v7 = vpop.permute.xlu0 %1253 }
 0x1e9   : > { %v1026_v55 = vadd.f32 %v1015_v34, %v979_v58  ;;  %v1021_v19 = vsel %vm1020_vm4, %v1015_v34, %v1017_v41 }
 0x1ea   : > { %v1027_v53 = vadd.f32 %v1021_v19, %v980_v3  ;;  %v1452_v3 = vld [vmem:[%s3036_s3] sm:$0xff] }
 0x1eb   : > { %v1073_v5 = vadd.f32 %v1062_v45, %v1026_v55 }
 0x1ec   : > { %v1019_v33 = vpop.permute.xlu1 %1018 }
 0x1ed   : > { %v1022_v39 = vsel %vm1020_vm4, %v1017_v41, %v1019_v33 }
 0x1ee   : > { %v1028_v42 = vadd.f32 %v1022_v39, %v981_v4 }
 0x1f0   : > { %v1064_v37 = vpop.permute.xlu1 %1063  ;;  %v2945_v22 = vpop.permute.xlu0 %1298 }
 0x1f1   : > { %v1068_v12 = vsel %vm1067_vm0, %v1062_v45, %v1064_v37  ;;  %v1069_v26 = vsel %vm1067_vm0, %v1064_v37, %v1066_v35 }
 0x1f2   : > { %v1074_v20 = vadd.f32 %v1068_v12, %v1027_v53  ;;  %v1075_v31 = vadd.f32 %v1069_v26, %v1028_v42 }
 0x1f4   : > { %v1109_v47 = vpop.permute.xlu1 %1108  ;;  %v2952_v25 = vpop.permute.xlu0 %1343 }
 0x1f5   : > { %v1120_v40 = vadd.f32 %v1109_v47, %v1073_v5  ;;  %v1115_v52 = vsel %vm1114_vm1, %v1109_v47, %v2925_v54 }
 0x1f6   : > { %v1121_v34 = vadd.f32 %v1115_v52, %v1074_v20 }
 0x1f7   : > { %v1167_v35 = vadd.f32 %v2927_v44, %v1120_v40 }
 0x1f8   : > { %v1113_v60 = vpop.permute.xlu1 %1112  ;;  %v1348_v10 = vpop.permute.xlu0 %1347 }
 0x1f9   : > { %v1116_v24 = vsel %vm1114_vm1, %v2925_v54, %v1113_v60 }
 0x1fa   : > { %v1122_v45 = vadd.f32 %v1116_v24, %v1075_v31 }
 0x1fc   : > { %v1158_v62 = vpop.permute.xlu1 %1157 }
 0x1fd   : > { %v1162_v41 = vsel %vm1161_vm5, %v2927_v44, %v1158_v62  ;;  %v1163_v46 = vsel %vm1161_vm5, %v1158_v62, %v2929_v8 }
 0x1fe   : > { %v1168_v61 = vadd.f32 %v1162_v41, %v1121_v34  ;;  %v1169_v54 = vadd.f32 %v1163_v46, %v1122_v45 }
 0x200   : > { %v1203_v50 = vpop.permute.xlu1 %1202  ;;  %v1393_v33 = vpop.permute.xlu0 %1392 }
 0x201   : > { %v1209_v15 = vsel %vm1208_vm6, %v1203_v50, %v2931_v16  ;;  %v1214_v60 = vadd.f32 %v1203_v50, %v1167_v35 }
 0x202   : > { %v1215_v8 = vadd.f32 %v1209_v15, %v1168_v61 }
 0x204   : > { %v1207_v29 = vpop.permute.xlu1 %1206  ;;  %v1438_v28 = vpop.permute.xlu0 %1437 }
 0x205   : > { %v1210_v47 = vsel %vm1208_vm6, %v2931_v16, %v1207_v29  ;;  %v1261_v16 = vadd.f32 %v2934_v59, %v1214_v60 }
 0x206   : > { %v1216_v62 = vadd.f32 %v1210_v47, %v1169_v54 }
 0x208   : > { %v1252_v32 = vpop.permute.xlu1 %1251 }
 0x209   : > { %v1256_v6 = vsel %vm1255_vm9, %v2934_v59, %v1252_v32  ;;  %v1257_v1 = vsel %vm1255_vm9, %v1252_v32, %v2938_v7 }
 0x20a   : > { %v1262_v2 = vadd.f32 %v1256_v6, %v1215_v8  ;;  %v1263_v63 = vadd.f32 %v1257_v1, %v1216_v62 }
 0x20c   : > { %v1297_v49 = vpop.permute.xlu1 %1296 }
 0x20d   : > { %v1303_v44 = vsel %vm1302_vm10, %v1297_v49, %v2945_v22  ;;  %v1308_v43 = vadd.f32 %v1297_v49, %v1261_v16 }
 0x20e   : > { %v1309_v29 = vadd.f32 %v1303_v44, %v1262_v2 }
 0x20f   : > { %v1355_v32 = vadd.f32 %v2952_v25, %v1308_v43 }
 0x210   : > { %v1301_v56 = vpop.permute.xlu1 %1300 }
 0x211   : > { %v1304_v14 = vsel %vm1302_vm10, %v2945_v22, %v1301_v56  ;;  %v1442_v22 = vpop.permute.xlu0 %1441 }
 0x212   : > { %v1310_v7 = vadd.f32 %v1304_v14, %v1263_v63 }
 0x214   : > { %v1346_v37 = vpop.permute.xlu1 %1345 }
 0x215   : > { %v1350_v50 = vsel %vm1349_vm12, %v2952_v25, %v1346_v37  ;;  %v1351_v21 = vsel %vm1349_vm12, %v1346_v37, %v1348_v10 }
 0x216   : > { %v1356_v30 = vadd.f32 %v1350_v50, %v1309_v29  ;;  %v1357_v58 = vadd.f32 %v1351_v21, %v1310_v7 }
 0x218   : > { %v1391_v13 = vpop.permute.xlu1 %1390 }
 0x219   : > { %v1397_v23 = vsel %vm1396_vm13, %v1391_v13, %v1393_v33  ;;  %v1402_v55 = vadd.f32 %v1391_v13, %v1355_v32 }
 0x21a   : > { %v1403_v38 = vadd.f32 %v1397_v23, %v1356_v30 }
 0x21b   : > { %v1449_v48 = vadd.f32 %v1438_v28, %v1402_v55 }
 0x21c   : > { %v1395_v57 = vpop.permute.xlu1 %1394 }
 0x21d   : > { %v1398_v0 = vsel %vm1396_vm13, %v1393_v33, %v1395_v57 }
 0x21e   : > { %v1404_v59 = vadd.f32 %v1398_v0, %v1357_v58 }
 0x220   : > { %v1440_v18 = vpop.permute.xlu1 %1439 }
 0x221   : > { %v1444_v36 = vsel %vm1443_vm14, %v1438_v28, %v1440_v18  ;;  %v1445_v51 = vsel %vm1443_vm14, %v1440_v18, %v1442_v22 }
 0x222   : > { %v1450_v17 = vadd.f32 %v1444_v36, %v1403_v38  ;;  %v1451_v9 = vadd.f32 %v1445_v51, %v1404_v59 }
 0x224   : > { %1466 = vrot.lane.b32.xlu0 %v1451_v9, %s2059_s10  ;;  %1464 = vrot.lane.b32.xlu1 %v1450_v17, %s2059_s10 }
 0x228   : > { %1456 = vperm.xlu0 %1861, %v1453_v11   ;;  %1462 = vrot.lane.b32.xlu1 %v1449_v48, %s2059_s10  ;;  %s1677_s10 = sshll.u32 %s2269_s7, 4 }
 0x229   : > { %s274_s26 = scalar_lea.vmem [#allocation8], %s1677_s10 }
 0x22a   : > { %s1578_s28 = sshll.u32 %s274_s26, 4  ;;  %s2986_s28 = int_to_ptr.vmem [resolvable:$true] %s1578_s28 }
 0x22b   : > { %s1928_s21 = scalar_lea.vmem %s2986_s28, 256  ;;  %p1935_p12 = scmp.lt.s32.totalorder %s2986_s28, %s1933_s25 }
 0x22c   : > { %p1929_p4 = scmp.ne.s32.totalorder %s2986_s28, %s1928_s21  ;;  %p1936_p13 = scmp.lt.s32.totalorder %s1934_s24, %s1928_s21 }
 0x22e   : > { %p1930_p6 = pnand %p1929_p4, %p2212_p10  ;;  %p1937_p0 = por %p1936_p13, %p1935_p12 }
 0x230   : > { %p1931_p8 = pneg %p1930_p6 }
 0x232   : > { %p1938_p5 = pnand %p1937_p0, %p1931_p8 }
 0x296   : > { %v1467_v25 = vpop.permute.xlu0 %1466  ;;  %v1465_v49 = vpop.permute.xlu1 %1464 }
 0x297   : > { %v1469_v19 = vsel %vm1419_vm15, %v1465_v49, %v1467_v25 }
 0x298   : > { %1476 = vmatprep.subr.mxu0 %v1469_v19 }
 0x29a   : > { %v1463_v39 = vpop.permute.xlu1 %1462 }
 0x29b   : > { %v1468_v4 = vsel %vm1419_vm15, %v1463_v39, %v1465_v49 }
 0x29c   : > { %1477 = vmatpush1.msra.mxu0 %v1468_v4 }
 0x29d   : > { %1684 = vmatmul.mubr.msk.f32.vlgmr.msra.gmra.mrb[0].mxu0 %vm1472_vm8, %v1452_v3 }
 0x2a7   : > { %v1457_v5 = vpop.permute.xlu0 %1456 }
 0x370   : > { %v1542_v12 = vpop.f32.mrb[0].mxu0 }
 0x371   : > { %v1543_v26 = vadd.f32 %v1542_v12, %v1457_v5  ;;  %v1544_v53 = vpop.f32.mrb[1].mxu0 }
 0x372   : > { %v1545_v42 = vadd.f32 %v1544_v53, %v1457_v5 }
 0x373   : > { %v1685_v40 = vmul.f32 -1.442695, %v1543_v26 }
 0x374   : > { %v1686_v10 = vmul.f32 -1.442695, %v1545_v42 }
 0x375   : > { %1862 = vpow2.f32 %v1685_v40 }
 0x376   : > { %1864 = vpow2.f32 %v1686_v10 }
 0x37f   : > { %v1863_v56 = vpop.eup %1862 }
 0x380   : > { %v1865_v52 = vpop.eup %1864  ;;  %v1553_v24 = vadd.f32 1.0, %v1863_v56 }
 0x381   : > { %v1554_v20 = vadd.f32 1.0, %v1865_v52 }
 0x382   : > { %1866 = vrcp.f32 %v1553_v24 }
 0x383   : > { %1868 = vrcp.f32 %v1554_v20 }
 0x38c   : > { %v1867_v31 = vpop.eup %1866 }
 0x38d   : > { %v1869_v41 = vpop.eup %1868  ;;  %v1559_v46 = vmul.f32 %v1867_v31, %v1543_v26 }
 0x38e   : > { %v1560_v34 = vmul.f32 %v1869_v41, %v1545_v42 }
 0x38f   : > { %1561 = vst [vmem:[%s274_s26] sm:$0xff] %v1559_v46 }
 0x390   : > { %1562 = vst [vmem:[%s274_s26 + $0x8] sm:$0xff] %v1560_v34 }
 0x391   : > { %1941 = shalt.err (!%p1938_p5)
}
 0x392   : > { %s1942_s7 = scalar_lea.hbm %s2984_s27, 256  ;;  %s1946_s16 = scalar_lea.hbm %s3038_s5, 512 }
 0x393   : > { %p1943_p9 = scmp.ne.s32.totalorder %s2984_s27, %s1942_s7  ;;  %p1947_p3 = scmp.lt.u32.totalorder %s2984_s27, %s3038_s5 }
 0x394   : > { %p1948_p7 = scmp.lt.u32.totalorder %s1946_s16, %s1942_s7  ;;  %p1950_p4 = scmp.lt.u32.totalorder %s1942_s7, %s2984_s27 }
 0x395   : > { %p1944_p1 = pnand %p1943_p9, %p2212_p10 }
 0x396   : > { %p1949_p11 = por %p1948_p7, %p1947_p3 }
 0x397   : > { %p1945_p2 = pneg %p1944_p1 }
 0x398   : > { %p1951_p6 = por %p1950_p4, %p1949_p11 }
 0x39a   : > { %p1952_p8 = pnand %p1951_p6, %p1945_p2 }
 0x39c   : > { %1955 = shalt.err (!%p1952_p8)
}
 0x39d   : > { %1702 = dma.vmem_to_hbm [thread:$0]  (%p2212_p10), %s2986_s28, 256, %s2984_s27, %s1564_s13  }
 0x39e PF: > { %s1590_s26 = sand.u32 1, %s1994_s18   ;;  %p3057_p12 = scmp.ne.s32.totalorder %s3047_s29, 0 }
 0x39f   : > { %p3058_p13 = scmp.ge.s32.totalorder %s2014_s23, 2  ;;  %s1591_s17 = scalar_lea.sflag [#allocation5], %s1590_s26 }
 0x3a1   : > { %p1713_p0 = pnand %p3058_p13, %p3057_p12 }
 0x3a3   : > { %1989 = dma.done.wait (!%p1713_p0), %s1591_s17, 256  }
 0x3a4   : > { %1991 = vsyncadd (!%p1713_p0), %s1591_s17, 4294967040  ;;  %s22_s23 = sadd.s32 1, %s2014_s23   ;;  %s3059_s18 = smov %s1998_s19 }
 0x3a5   : > { %p19_p5 = scmp.ge.s32.totalorder %s22_s23, 4   ;;  %s3060_s19 = smov %s2002_s20 }
 0x3a6   : > { %s3061_s20 = smov %s2221_s15  ;;  %s3062_s21 = smov %s2010_s22 }
 0x3a7   : > { %s3063_s22 = smov %s3065_s9  ;;  %21 = sbr.rel (!%p19_p5) target bundleno = 7 (0x7), region = 99 }
 0x3ae   :  { %1596 = vsyncpa [#allocation4], 1 }
 0x3af   :  { %1598 = vsyncpa [#allocation4 + $0x1], 1 }
 0x3b0   :  { %1599 = vsyncpa [#allocation7], 1 }
 0x3b1   :  { %1600 = vsyncpa [#allocation5], 1 }
 0x3b2   :  { %1602 = vsyncpa [#allocation5 + $0x1], 1 }

</bundles_post_ra>
